<compile_context>
chip_gen: v7x
topology: tpu7x:2x2x1
jax: 0.10.0
libtpu: 0.0.40
codegen_flags: <defaults>
</compile_context>

<pallas_src>
import functools
import math

import jax
import jax.numpy as jnp
from jax.experimental import pallas as pl
from jax.experimental.pallas import tpu as pltpu


# ----------------------------------------------------------------------------
# Helpers
# ----------------------------------------------------------------------------
def _block_diag2(m):
    """[[m, 0], [0, m]] so one wide matmul processes both feature views."""
    r, c = m.shape
    z = jnp.zeros((r, c), m.dtype)
    top = jnp.concatenate([m, z], axis=1)
    bot = jnp.concatenate([z, m], axis=1)
    return jnp.concatenate([top, bot], axis=0)


def _softmax2(w1, w2):
    """Row-wise softmax over exactly two logits (the two graph views)."""
    m = jnp.maximum(w1, w2)
    e1 = jnp.exp(w1 - m)
    e2 = jnp.exp(w2 - m)
    inv = 1.0 / (e1 + e2)
    return e1 * inv, e2 * inv


# ----------------------------------------------------------------------------
# Fused kernel: two SpaNCMG passes (adj1/gn1 and adj2/gn2) + 2-view attention.
# ----------------------------------------------------------------------------
def mix_spancmg_kernel(featc_ref, adjs_ref, gns_ref, w1b_ref, w2_ref, wbb_ref,
                       att1_ref, att2_ref, att3_ref,
                       hiden_ref, h_ref, ret_ref, *, n, f_out):
    featc = featc_ref[...]              # (N, 2*F_in)      = [feat | feat_a]
    w1b = w1b_ref[...]                  # (2F_in, 2F_out)  = blockdiag(W1, W1)
    w2 = w2_ref[...]                    # (F_out, F_in)
    wbb = wbb_ref[...]                  # (2F_out, 2F_out) = blockdiag(Wb, Wb)
    adjs = adjs_ref[...]                # (2N, N)          = [adj1 ; adj2]
    gns = gns_ref[...]                  # (2N, N)          = [gn1  ; gn2 ]

    # Both feature views through W1 with ONE wide matmul (dropout p=0 -> id):
    #   fw_cat = [feat @ W1 | feat_a @ W1], shared by the two graphs.
    fw_cat = jnp.dot(featc, w1b, preferred_element_type=jnp.float32)   # (N, 2F_out)

    # Both graphs x both views in ONE matmul: rows [0:N] graph1, [N:2N] graph2,
    # cols [:F_out] the feat view (z / hiden_emb), cols [F_out:] the feat_a view.
    zz = jnp.dot(adjs, fw_cat, preferred_element_type=jnp.float32)     # (2N, 2F_out)
    z_both = zz[:, :f_out]                                             # (2N, F_out)

    # h = adj @ (z @ W2): batch the W2 projection across both graphs.
    hw_both = jnp.dot(z_both, w2, preferred_element_type=jnp.float32)  # (2N, F_in)

    emb_both = jnp.maximum(zz, 0.0)                                    # relu, all at once
    # Discriminator: nn.Bilinear(F_out, F_out, 1), zero bias.  One block-diag
    # matmul applies Wb to both graphs and both views.
    embw_both = jnp.dot(emb_both, wbb, preferred_element_type=jnp.float32)  # (2N, 2F_out)

    def per_graph(adj, gn, hw_g, emb_g, embw_g):
        # second adj hop of the h branch (same association order as PyTorch)
        h = jnp.dot(adj, hw_g, preferred_element_type=jnp.float32)     # (N, F_in)

        # AvgReadout for both views in one gn matmul, then per-view
        # F.normalize(p=2, dim=1) + sigmoid.  The approx reciprocal is safe:
        # any per-row scale error cancels exactly inside the L2 normalize.
        inv_rs = pl.reciprocal(jnp.sum(gn, axis=1, keepdims=True), approx=True)
        ge = jnp.dot(gn, emb_g, preferred_element_type=jnp.float32) * inv_rs
        ge1 = ge[:, :f_out]
        ge2 = ge[:, f_out:]
        n1 = jax.lax.rsqrt(jnp.maximum(jnp.sum(ge1 * ge1, axis=1, keepdims=True), 1e-24))
        n2 = jax.lax.rsqrt(jnp.maximum(jnp.sum(ge2 * ge2, axis=1, keepdims=True), 1e-24))
        g = jax.nn.sigmoid(ge1 * n1)
        g_a = jax.nn.sigmoid(ge2 * n2)

        # Per-row bilinear contractions: VPU multiplies + lane reductions.
        emb_w = embw_g[:, :f_out]
        emb_a_w = embw_g[:, f_out:]
        sc1 = jnp.sum(emb_w * g, axis=1, keepdims=True)        # f_k(emb,   g)
        sc2 = jnp.sum(emb_a_w * g, axis=1, keepdims=True)      # f_k(emb_a, g)
        sc1a = jnp.sum(emb_a_w * g_a, axis=1, keepdims=True)   # f_k(emb_a, g_a)
        sc2a = jnp.sum(emb_w * g_a, axis=1, keepdims=True)     # f_k(emb,   g_a)
        return h, sc1, sc2, sc1a, sc2a

    z1, z2 = z_both[:n], z_both[n:]
    h1, sc1_1, sc2_1, sc1a_1, sc2a_1 = per_graph(
        adjs[:n], gns[:n], hw_both[:n], emb_both[:n], embw_both[:n])
    h2, sc1_2, sc2_2, sc1a_2, sc2a_2 = per_graph(
        adjs[n:], gns[n:], hw_both[n:], emb_both[n:], embw_both[n:])

    # ---- 2-view attention fusion, fully in-kernel (no extra launches). ----
    att1 = att1_ref[...]                # (1, F_out)
    att2 = att2_ref[...]                # (1, F_in)

    b1, b2 = _softmax2(jnp.sum(z1 * att1, axis=1, keepdims=True),
                       jnp.sum(z2 * att1, axis=1, keepdims=True))
    hiden_ref[...] = b1 * z1 + b2 * z2

    c1, c2 = _softmax2(jnp.sum(h1 * att2, axis=1, keepdims=True),
                       jnp.sum(h2 * att2, axis=1, keepdims=True))
    h_ref[...] = c1 * h1 + c2 * h2

    a0 = att3_ref[0]                    # attention3 weights as SMEM scalars
    a1 = att3_ref[1]
    r1, r2 = _softmax2(sc1_1 * a0 + sc2_1 * a1, sc1_2 * a0 + sc2_2 * a1)
    q1, q2 = _softmax2(sc1a_1 * a0 + sc2a_1 * a1, sc1a_2 * a0 + sc2a_2 * a1)
    # Single lane-packed score slab: [ret | ret_a] -> one store stream.
    ret_ref[...] = jnp.concatenate(
        [r1 * sc1_1 + r2 * sc1_2,
         r1 * sc2_1 + r2 * sc2_2,
         q1 * sc1a_1 + q2 * sc1a_2,
         q1 * sc2a_1 + q2 * sc2a_2], axis=1)


# ----------------------------------------------------------------------------
# Wrapper: prepares the batched-view / batched-graph operands, one kernel call.
# ----------------------------------------------------------------------------
@jax.jit
def mix_spancmg_forward(features, features_a, adj1, adj2, gn1, gn2, params):
    N, f_in = features.shape
    f_out = params["w1"].shape[1]

    feat_cat = jnp.concatenate([features, features_a], axis=1)     # (N, 2*F_in)
    adj_stack = jnp.concatenate([adj1, adj2], axis=0)              # (2N, N)
    gn_stack = jnp.concatenate([gn1, gn2], axis=0)                 # (2N, N)
    w1_blk = _block_diag2(params["w1"])                            # (2F_in, 2F_out)
    wb_blk = _block_diag2(params["wb"])                            # (2F_out, 2F_out)
    att1_row = params["att1"].reshape(1, f_out)
    att2_row = params["att2"].reshape(1, f_in)
    att3_vec = params["att3"].reshape(2)

    vmem = pl.BlockSpec(memory_space=pltpu.MemorySpace.VMEM)
    smem = pl.BlockSpec(memory_space=pltpu.MemorySpace.SMEM)

    out_shapes = (
        jax.ShapeDtypeStruct((N, f_out), jnp.float32),   # hiden_emb (attention-fused)
        jax.ShapeDtypeStruct((N, f_in), jnp.float32),    # h         (attention-fused)
        jax.ShapeDtypeStruct((N, 4), jnp.float32),       # packed [ret | ret_a]
    )

    hiden, h, ret_pack = pl.pallas_call(
        functools.partial(mix_spancmg_kernel, n=N, f_out=f_out),
        out_shape=out_shapes,
        in_specs=[vmem] * 8 + [smem],
        out_specs=(vmem, vmem, vmem),
        compiler_params=pltpu.CompilerParams(
            vmem_limit_bytes=64 * 1024 * 1024),
    )(feat_cat, adj_stack, gn_stack, w1_blk, params["w2"], wb_blk,
      att1_row, att2_row, att3_vec)

    return hiden, h, ret_pack[:, 0:2], ret_pack[:, 2:4]


# ----------------------------------------------------------------------------
# Deterministic parameter construction (xavier-uniform style, synthetic).
# ----------------------------------------------------------------------------
def xavier_uniform(key, shape):
    fan_in, fan_out = shape[-2], shape[-1]
    bound = math.sqrt(6.0 / (fan_in + fan_out))
    return jax.random.uniform(key, shape, jnp.float32, -bound, bound)


def make_params(key, in_features, out_features):
    ks = jax.random.split(key, 6)
    return {
        "w1": xavier_uniform(ks[0], (in_features, out_features)),
        "w2": xavier_uniform(ks[1], (out_features, in_features)),
        # nn.Bilinear(out, out, 1) weight, xavier-init, bias = 0 (folded away)
        "wb": xavier_uniform(ks[2], (out_features, out_features)),
        "att1": xavier_uniform(ks[3], (out_features, 1)),
        "att2": xavier_uniform(ks[4], (in_features, 1)),
        "att3": xavier_uniform(ks[5], (2, 1)),
    }


# ----------------------------------------------------------------------------
# Pure-JAX reference (mirrors the PyTorch forward) used only as a sanity check.
# ----------------------------------------------------------------------------
def _ref_spancmg(feat, feat_a, adj, gn, p):
    z = adj @ (feat @ p["w1"])
    h = adj @ (z @ p["w2"])
    emb = jnp.maximum(z, 0.0)
    emb_a = jnp.maximum(adj @ (feat_a @ p["w1"]), 0.0)
    rs = jnp.sum(gn, axis=1, keepdims=True)

    def readout(e):
        ge = (gn @ e) / rs
        ge = ge / jnp.maximum(jnp.linalg.norm(ge, axis=1, keepdims=True), 1e-12)
        return jax.nn.sigmoid(ge)

    g, g_a = readout(emb), readout(emb_a)
    bil = lambda x1, x2: jnp.sum((x1 @ p["wb"]) * x2, axis=1, keepdims=True)
    ret = jnp.concatenate([bil(emb, g), bil(emb_a, g)], axis=1)
    ret_a = jnp.concatenate([bil(emb_a, g_a), bil(emb, g_a)], axis=1)
    return z, h, ret, ret_a


def _ref_attention(z1, z2, proj):
    z = jnp.stack([z1, z2], axis=1)                     # (N, 2, D)
    w = jnp.einsum("nvd,dk->nvk", z, proj)              # (N, 2, 1)
    beta = jax.nn.softmax(w, axis=1)
    return jnp.sum(beta * z, axis=1)


def _ref_mix(features, features_a, adj1, adj2, gn1, gn2, p):
    he1, h1, r1, ra1 = _ref_spancmg(features, features_a, adj1, gn1, p)
    he2, h2, r2, ra2 = _ref_spancmg(features, features_a, adj2, gn2, p)
    return (_ref_attention(he1, he2, p["att1"]),
            _ref_attention(h1, h2, p["att2"]),
            _ref_attention(r1, r2, p["att3"]),
            _ref_attention(ra1, ra2, p["att3"]))


if __name__ == "__main__":
    N, IN_F, OUT_F = 16, 32, 16

    key = jax.random.PRNGKey(0)
    k_feat, k_feat_a, k_a1, k_a2, k_g1, k_g2, k_par = jax.random.split(key, 7)

    features = jax.random.normal(k_feat, (N, IN_F), jnp.float32)
    features_a = jax.random.normal(k_feat_a, (N, IN_F), jnp.float32)

    def make_adj(k):
        a = jnp.abs(jax.random.normal(k, (N, N), jnp.float32)) + jnp.eye(N)
        return a / jnp.sum(a, axis=1, keepdims=True)     # row-normalized

    adj1, adj2 = make_adj(k_a1), make_adj(k_a2)

    def make_neigh(k):
        m = (jax.random.uniform(k, (N, N)) > 0.5).astype(jnp.float32)
        return jnp.maximum(m, jnp.eye(N, dtype=jnp.float32))  # non-zero row sums

    gn1, gn2 = make_neigh(k_g1), make_neigh(k_g2)

    params = make_params(k_par, IN_F, OUT_F)

    outs = mix_spancmg_forward(features, features_a, adj1, adj2, gn1, gn2, params)
    outs = jax.block_until_ready(outs)

    refs = _ref_mix(features, features_a, adj1, adj2, gn1, gn2, params)
    for o, r in zip(outs, refs):
        assert o.shape == r.shape, (o.shape, r.shape)
        assert jnp.allclose(o, r, atol=2e-4, rtol=2e-4), float(jnp.max(jnp.abs(o - r)))

    print("KERNEL_OK")
</pallas_src>

<mosaic_0001>
module attributes {stable_mosaic.version = 11 : i64} {
  func.func @mix_spancmg_kernel(%arg0: memref<16x64xf32, #tpu.memory_space<vmem>>, %arg1: memref<32x16xf32, #tpu.memory_space<vmem>>, %arg2: memref<32x16xf32, #tpu.memory_space<vmem>>, %arg3: memref<64x32xf32, #tpu.memory_space<vmem>>, %arg4: memref<16x32xf32, #tpu.memory_space<vmem>>, %arg5: memref<32x32xf32, #tpu.memory_space<vmem>>, %arg6: memref<1x16xf32, #tpu.memory_space<vmem>>, %arg7: memref<1x32xf32, #tpu.memory_space<vmem>>, %arg8: memref<2xf32, #tpu.memory_space<smem>>, %arg9: memref<16x16xf32, #tpu.memory_space<vmem>>, %arg10: memref<16x32xf32, #tpu.memory_space<vmem>>, %arg11: memref<16x4xf32, #tpu.memory_space<vmem>>) attributes {dimension_semantics = [], scalar_prefetch = 0 : i64, scratch_operands = 0 : i64, tpu.core_type = #tpu.core_type<tc>} {
    %c0 = arith.constant 0 : index
    %c0_0 = arith.constant 0 : index
    %0 = vector.load %arg0[%c0, %c0_0] : memref<16x64xf32, #tpu.memory_space<vmem>>, vector<16x64xf32>
    %c0_1 = arith.constant 0 : index
    %c0_2 = arith.constant 0 : index
    %1 = vector.load %arg3[%c0_1, %c0_2] : memref<64x32xf32, #tpu.memory_space<vmem>>, vector<64x32xf32>
    %c0_3 = arith.constant 0 : index
    %c0_4 = arith.constant 0 : index
    %2 = vector.load %arg4[%c0_3, %c0_4] : memref<16x32xf32, #tpu.memory_space<vmem>>, vector<16x32xf32>
    %c0_5 = arith.constant 0 : index
    %c0_6 = arith.constant 0 : index
    %3 = vector.load %arg5[%c0_5, %c0_6] : memref<32x32xf32, #tpu.memory_space<vmem>>, vector<32x32xf32>
    %c0_7 = arith.constant 0 : index
    %c0_8 = arith.constant 0 : index
    %4 = vector.load %arg1[%c0_7, %c0_8] : memref<32x16xf32, #tpu.memory_space<vmem>>, vector<32x16xf32>
    %c0_9 = arith.constant 0 : index
    %c0_10 = arith.constant 0 : index
    %5 = vector.load %arg2[%c0_9, %c0_10] : memref<32x16xf32, #tpu.memory_space<vmem>>, vector<32x16xf32>
    %cst = arith.constant dense<0.000000e+00> : vector<16x32xf32>
    %6 = tpu.matmul %0, %1, %cst {dimension_numbers = #tpu.dot_dimension_numbers<[1], [0], [0], [1], [0, 0, 1, 1], [], []>} : vector<16x64xf32>, vector<64x32xf32>, vector<16x32xf32> -> vector<16x32xf32>
    %cst_11 = arith.constant dense<0.000000e+00> : vector<32x32xf32>
    %7 = tpu.matmul %4, %6, %cst_11 {dimension_numbers = #tpu.dot_dimension_numbers<[1], [0], [0], [1], [0, 0, 1, 1], [], []>} : vector<32x16xf32>, vector<16x32xf32>, vector<32x32xf32> -> vector<32x32xf32>
    %8 = vector.extract_strided_slice %7 {offsets = [0, 0], sizes = [32, 16], strides = [1, 1]} : vector<32x32xf32> to vector<32x16xf32>
    %cst_12 = arith.constant dense<0.000000e+00> : vector<32x32xf32>
    %9 = tpu.matmul %8, %2, %cst_12 {dimension_numbers = #tpu.dot_dimension_numbers<[1], [0], [0], [1], [0, 0, 1, 1], [], []>} : vector<32x16xf32>, vector<16x32xf32>, vector<32x32xf32> -> vector<32x32xf32>
    %cst_13 = arith.constant 0.000000e+00 : f32
    %10 = vector.broadcast %cst_13 : f32 to vector<32x32xf32>
    %11 = arith.maximumf %7, %10 : vector<32x32xf32>
    %cst_14 = arith.constant dense<0.000000e+00> : vector<32x32xf32>
    %12 = tpu.matmul %11, %3, %cst_14 {dimension_numbers = #tpu.dot_dimension_numbers<[1], [0], [0], [1], [0, 0, 1, 1], [], []>} : vector<32x32xf32>, vector<32x32xf32>, vector<32x32xf32> -> vector<32x32xf32>
    %13 = vector.extract_strided_slice %8 {offsets = [0, 0], sizes = [16, 16], strides = [1, 1]} : vector<32x16xf32> to vector<16x16xf32>
    %14 = vector.extract_strided_slice %8 {offsets = [16, 0], sizes = [16, 16], strides = [1, 1]} : vector<32x16xf32> to vector<16x16xf32>
    %15 = vector.extract_strided_slice %4 {offsets = [0, 0], sizes = [16, 16], strides = [1, 1]} : vector<32x16xf32> to vector<16x16xf32>
    %16 = vector.extract_strided_slice %5 {offsets = [0, 0], sizes = [16, 16], strides = [1, 1]} : vector<32x16xf32> to vector<16x16xf32>
    %17 = vector.extract_strided_slice %9 {offsets = [0, 0], sizes = [16, 32], strides = [1, 1]} : vector<32x32xf32> to vector<16x32xf32>
    %18 = vector.extract_strided_slice %11 {offsets = [0, 0], sizes = [16, 32], strides = [1, 1]} : vector<32x32xf32> to vector<16x32xf32>
    %19 = vector.extract_strided_slice %12 {offsets = [0, 0], sizes = [16, 32], strides = [1, 1]} : vector<32x32xf32> to vector<16x32xf32>
    %cst_15 = arith.constant dense<0.000000e+00> : vector<16x32xf32>
    %20 = tpu.matmul %15, %17, %cst_15 {dimension_numbers = #tpu.dot_dimension_numbers<[1], [0], [0], [1], [0, 0, 1, 1], [], []>} : vector<16x16xf32>, vector<16x32xf32>, vector<16x32xf32> -> vector<16x32xf32>
    %cst_16 = arith.constant dense<0.000000e+00> : vector<16xf32>
    %21 = vector.multi_reduction <add>, %16, %cst_16 [1] : vector<16x16xf32> to vector<16xf32>
    %22 = vector.shape_cast %21 : vector<16xf32> to vector<16x1xf32>
    %23 = tpu.reciprocal %22 {approx = true} : vector<16x1xf32> -> vector<16x1xf32>
    %cst_17 = arith.constant dense<0.000000e+00> : vector<16x32xf32>
    %24 = tpu.matmul %16, %18, %cst_17 {dimension_numbers = #tpu.dot_dimension_numbers<[1], [0], [0], [1], [0, 0, 1, 1], [], []>} : vector<16x16xf32>, vector<16x32xf32>, vector<16x32xf32> -> vector<16x32xf32>
    %25 = vector.broadcast %23 : vector<16x1xf32> to vector<16x32xf32>
    %26 = arith.mulf %24, %25 : vector<16x32xf32>
    %27 = vector.extract_strided_slice %26 {offsets = [0, 0], sizes = [16, 16], strides = [1, 1]} : vector<16x32xf32> to vector<16x16xf32>
    %28 = vector.extract_strided_slice %26 {offsets = [0, 16], sizes = [16, 16], strides = [1, 1]} : vector<16x32xf32> to vector<16x16xf32>
    %29 = arith.mulf %27, %27 : vector<16x16xf32>
    %cst_18 = arith.constant dense<0.000000e+00> : vector<16xf32>
    %30 = vector.multi_reduction <add>, %29, %cst_18 [1] : vector<16x16xf32> to vector<16xf32>
    %31 = vector.shape_cast %30 : vector<16xf32> to vector<16x1xf32>
    %cst_19 = arith.constant 1.000000e-24 : f32
    %32 = vector.broadcast %cst_19 : f32 to vector<16x1xf32>
    %33 = arith.maximumf %31, %32 : vector<16x1xf32>
    %34 = math.rsqrt %33 : vector<16x1xf32>
    %35 = arith.mulf %28, %28 : vector<16x16xf32>
    %cst_20 = arith.constant dense<0.000000e+00> : vector<16xf32>
    %36 = vector.multi_reduction <add>, %35, %cst_20 [1] : vector<16x16xf32> to vector<16xf32>
    %37 = vector.shape_cast %36 : vector<16xf32> to vector<16x1xf32>
    %cst_21 = arith.constant 1.000000e-24 : f32
    %38 = vector.broadcast %cst_21 : f32 to vector<16x1xf32>
    %39 = arith.maximumf %37, %38 : vector<16x1xf32>
    %40 = math.rsqrt %39 : vector<16x1xf32>
    %41 = vector.broadcast %34 : vector<16x1xf32> to vector<16x16xf32>
    %42 = arith.mulf %27, %41 : vector<16x16xf32>
    %43 = arith.negf %42 : vector<16x16xf32>
    %44 = math.exp %43 : vector<16x16xf32>
    %cst_22 = arith.constant 1.000000e+00 : f32
    %45 = vector.broadcast %cst_22 : f32 to vector<16x16xf32>
    %46 = arith.addf %45, %44 : vector<16x16xf32>
    %47 = arith.divf %45, %46 : vector<16x16xf32>
    %48 = vector.broadcast %40 : vector<16x1xf32> to vector<16x16xf32>
    %49 = arith.mulf %28, %48 : vector<16x16xf32>
    %50 = arith.negf %49 : vector<16x16xf32>
    %51 = math.exp %50 : vector<16x16xf32>
    %cst_23 = arith.constant 1.000000e+00 : f32
    %52 = vector.broadcast %cst_23 : f32 to vector<16x16xf32>
    %53 = arith.addf %52, %51 : vector<16x16xf32>
    %54 = arith.divf %52, %53 : vector<16x16xf32>
    %55 = vector.extract_strided_slice %19 {offsets = [0, 0], sizes = [16, 16], strides = [1, 1]} : vector<16x32xf32> to vector<16x16xf32>
    %56 = vector.extract_strided_slice %19 {offsets = [0, 16], sizes = [16, 16], strides = [1, 1]} : vector<16x32xf32> to vector<16x16xf32>
    %57 = arith.mulf %55, %47 : vector<16x16xf32>
    %cst_24 = arith.constant dense<0.000000e+00> : vector<16xf32>
    %58 = vector.multi_reduction <add>, %57, %cst_24 [1] : vector<16x16xf32> to vector<16xf32>
    %59 = vector.shape_cast %58 : vector<16xf32> to vector<16x1xf32>
    %60 = arith.mulf %56, %47 : vector<16x16xf32>
    %cst_25 = arith.constant dense<0.000000e+00> : vector<16xf32>
    %61 = vector.multi_reduction <add>, %60, %cst_25 [1] : vector<16x16xf32> to vector<16xf32>
    %62 = vector.shape_cast %61 : vector<16xf32> to vector<16x1xf32>
    %63 = arith.mulf %56, %54 : vector<16x16xf32>
    %cst_26 = arith.constant dense<0.000000e+00> : vector<16xf32>
    %64 = vector.multi_reduction <add>, %63, %cst_26 [1] : vector<16x16xf32> to vector<16xf32>
    %65 = vector.shape_cast %64 : vector<16xf32> to vector<16x1xf32>
    %66 = arith.mulf %55, %54 : vector<16x16xf32>
    %cst_27 = arith.constant dense<0.000000e+00> : vector<16xf32>
    %67 = vector.multi_reduction <add>, %66, %cst_27 [1] : vector<16x16xf32> to vector<16xf32>
    %68 = vector.shape_cast %67 : vector<16xf32> to vector<16x1xf32>
    %69 = vector.extract_strided_slice %4 {offsets = [16, 0], sizes = [16, 16], strides = [1, 1]} : vector<32x16xf32> to vector<16x16xf32>
    %70 = vector.extract_strided_slice %5 {offsets = [16, 0], sizes = [16, 16], strides = [1, 1]} : vector<32x16xf32> to vector<16x16xf32>
    %71 = vector.extract_strided_slice %9 {offsets = [16, 0], sizes = [16, 32], strides = [1, 1]} : vector<32x32xf32> to vector<16x32xf32>
    %72 = vector.extract_strided_slice %11 {offsets = [16, 0], sizes = [16, 32], strides = [1, 1]} : vector<32x32xf32> to vector<16x32xf32>
    %73 = vector.extract_strided_slice %12 {offsets = [16, 0], sizes = [16, 32], strides = [1, 1]} : vector<32x32xf32> to vector<16x32xf32>
    %cst_28 = arith.constant dense<0.000000e+00> : vector<16x32xf32>
    %74 = tpu.matmul %69, %71, %cst_28 {dimension_numbers = #tpu.dot_dimension_numbers<[1], [0], [0], [1], [0, 0, 1, 1], [], []>} : vector<16x16xf32>, vector<16x32xf32>, vector<16x32xf32> -> vector<16x32xf32>
    %cst_29 = arith.constant dense<0.000000e+00> : vector<16xf32>
    %75 = vector.multi_reduction <add>, %70, %cst_29 [1] : vector<16x16xf32> to vector<16xf32>
    %76 = vector.shape_cast %75 : vector<16xf32> to vector<16x1xf32>
    %77 = tpu.reciprocal %76 {approx = true} : vector<16x1xf32> -> vector<16x1xf32>
    %cst_30 = arith.constant dense<0.000000e+00> : vector<16x32xf32>
    %78 = tpu.matmul %70, %72, %cst_30 {dimension_numbers = #tpu.dot_dimension_numbers<[1], [0], [0], [1], [0, 0, 1, 1], [], []>} : vector<16x16xf32>, vector<16x32xf32>, vector<16x32xf32> -> vector<16x32xf32>
    %79 = vector.broadcast %77 : vector<16x1xf32> to vector<16x32xf32>
    %80 = arith.mulf %78, %79 : vector<16x32xf32>
    %81 = vector.extract_strided_slice %80 {offsets = [0, 0], sizes = [16, 16], strides = [1, 1]} : vector<16x32xf32> to vector<16x16xf32>
    %82 = vector.extract_strided_slice %80 {offsets = [0, 16], sizes = [16, 16], strides = [1, 1]} : vector<16x32xf32> to vector<16x16xf32>
    %83 = arith.mulf %81, %81 : vector<16x16xf32>
    %cst_31 = arith.constant dense<0.000000e+00> : vector<16xf32>
    %84 = vector.multi_reduction <add>, %83, %cst_31 [1] : vector<16x16xf32> to vector<16xf32>
    %85 = vector.shape_cast %84 : vector<16xf32> to vector<16x1xf32>
    %cst_32 = arith.constant 1.000000e-24 : f32
    %86 = vector.broadcast %cst_32 : f32 to vector<16x1xf32>
    %87 = arith.maximumf %85, %86 : vector<16x1xf32>
    %88 = math.rsqrt %87 : vector<16x1xf32>
    %89 = arith.mulf %82, %82 : vector<16x16xf32>
    %cst_33 = arith.constant dense<0.000000e+00> : vector<16xf32>
    %90 = vector.multi_reduction <add>, %89, %cst_33 [1] : vector<16x16xf32> to vector<16xf32>
    %91 = vector.shape_cast %90 : vector<16xf32> to vector<16x1xf32>
    %cst_34 = arith.constant 1.000000e-24 : f32
    %92 = vector.broadcast %cst_34 : f32 to vector<16x1xf32>
    %93 = arith.maximumf %91, %92 : vector<16x1xf32>
    %94 = math.rsqrt %93 : vector<16x1xf32>
    %95 = vector.broadcast %88 : vector<16x1xf32> to vector<16x16xf32>
    %96 = arith.mulf %81, %95 : vector<16x16xf32>
    %97 = arith.negf %96 : vector<16x16xf32>
    %98 = math.exp %97 : vector<16x16xf32>
    %cst_35 = arith.constant 1.000000e+00 : f32
    %99 = vector.broadcast %cst_35 : f32 to vector<16x16xf32>
    %100 = arith.addf %99, %98 : vector<16x16xf32>
    %101 = arith.divf %99, %100 : vector<16x16xf32>
    %102 = vector.broadcast %94 : vector<16x1xf32> to vector<16x16xf32>
    %103 = arith.mulf %82, %102 : vector<16x16xf32>
    %104 = arith.negf %103 : vector<16x16xf32>
    %105 = math.exp %104 : vector<16x16xf32>
    %cst_36 = arith.constant 1.000000e+00 : f32
    %106 = vector.broadcast %cst_36 : f32 to vector<16x16xf32>
    %107 = arith.addf %106, %105 : vector<16x16xf32>
    %108 = arith.divf %106, %107 : vector<16x16xf32>
    %109 = vector.extract_strided_slice %73 {offsets = [0, 0], sizes = [16, 16], strides = [1, 1]} : vector<16x32xf32> to vector<16x16xf32>
    %110 = vector.extract_strided_slice %73 {offsets = [0, 16], sizes = [16, 16], strides = [1, 1]} : vector<16x32xf32> to vector<16x16xf32>
    %111 = arith.mulf %109, %101 : vector<16x16xf32>
    %cst_37 = arith.constant dense<0.000000e+00> : vector<16xf32>
    %112 = vector.multi_reduction <add>, %111, %cst_37 [1] : vector<16x16xf32> to vector<16xf32>
    %113 = vector.shape_cast %112 : vector<16xf32> to vector<16x1xf32>
    %114 = arith.mulf %110, %101 : vector<16x16xf32>
    %cst_38 = arith.constant dense<0.000000e+00> : vector<16xf32>
    %115 = vector.multi_reduction <add>, %114, %cst_38 [1] : vector<16x16xf32> to vector<16xf32>
    %116 = vector.shape_cast %115 : vector<16xf32> to vector<16x1xf32>
    %117 = arith.mulf %110, %108 : vector<16x16xf32>
    %cst_39 = arith.constant dense<0.000000e+00> : vector<16xf32>
    %118 = vector.multi_reduction <add>, %117, %cst_39 [1] : vector<16x16xf32> to vector<16xf32>
    %119 = vector.shape_cast %118 : vector<16xf32> to vector<16x1xf32>
    %120 = arith.mulf %109, %108 : vector<16x16xf32>
    %cst_40 = arith.constant dense<0.000000e+00> : vector<16xf32>
    %121 = vector.multi_reduction <add>, %120, %cst_40 [1] : vector<16x16xf32> to vector<16xf32>
    %122 = vector.shape_cast %121 : vector<16xf32> to vector<16x1xf32>
    %c0_41 = arith.constant 0 : index
    %c0_42 = arith.constant 0 : index
    %123 = vector.load %arg6[%c0_41, %c0_42] : memref<1x16xf32, #tpu.memory_space<vmem>>, vector<1x16xf32>
    %c0_43 = arith.constant 0 : index
    %c0_44 = arith.constant 0 : index
    %124 = vector.load %arg7[%c0_43, %c0_44] : memref<1x32xf32, #tpu.memory_space<vmem>>, vector<1x32xf32>
    %125 = vector.broadcast %123 : vector<1x16xf32> to vector<16x16xf32>
    %126 = arith.mulf %13, %125 : vector<16x16xf32>
    %cst_45 = arith.constant dense<0.000000e+00> : vector<16xf32>
    %127 = vector.multi_reduction <add>, %126, %cst_45 [1] : vector<16x16xf32> to vector<16xf32>
    %128 = vector.shape_cast %127 : vector<16xf32> to vector<16x1xf32>
    %129 = vector.broadcast %123 : vector<1x16xf32> to vector<16x16xf32>
    %130 = arith.mulf %14, %129 : vector<16x16xf32>
    %cst_46 = arith.constant dense<0.000000e+00> : vector<16xf32>
    %131 = vector.multi_reduction <add>, %130, %cst_46 [1] : vector<16x16xf32> to vector<16xf32>
    %132 = vector.shape_cast %131 : vector<16xf32> to vector<16x1xf32>
    %133 = arith.maximumf %128, %132 : vector<16x1xf32>
    %134 = arith.subf %128, %133 : vector<16x1xf32>
    %135 = math.exp %134 : vector<16x1xf32>
    %136 = arith.subf %132, %133 : vector<16x1xf32>
    %137 = math.exp %136 : vector<16x1xf32>
    %138 = arith.addf %135, %137 : vector<16x1xf32>
    %cst_47 = arith.constant 1.000000e+00 : f32
    %139 = vector.broadcast %cst_47 : f32 to vector<16x1xf32>
    %140 = arith.divf %139, %138 : vector<16x1xf32>
    %141 = arith.mulf %135, %140 : vector<16x1xf32>
    %142 = arith.mulf %137, %140 : vector<16x1xf32>
    %143 = vector.broadcast %141 : vector<16x1xf32> to vector<16x16xf32>
    %144 = arith.mulf %143, %13 : vector<16x16xf32>
    %145 = vector.broadcast %142 : vector<16x1xf32> to vector<16x16xf32>
    %146 = arith.mulf %145, %14 : vector<16x16xf32>
    %147 = arith.addf %144, %146 : vector<16x16xf32>
    %c0_48 = arith.constant 0 : index
    %c0_49 = arith.constant 0 : index
    %148 = vector.load %arg9[%c0_48, %c0_49] : memref<16x16xf32, #tpu.memory_space<vmem>>, vector<16x16xf32>
    tpu.vector_store %arg9[%c0_48, %c0_49], %147 {strides = array<i32>} : memref<16x16xf32, #tpu.memory_space<vmem>>, vector<16x16xf32>,
    %149 = vector.broadcast %124 : vector<1x32xf32> to vector<16x32xf32>
    %150 = arith.mulf %20, %149 : vector<16x32xf32>
    %cst_50 = arith.constant dense<0.000000e+00> : vector<16xf32>
    %151 = vector.multi_reduction <add>, %150, %cst_50 [1] : vector<16x32xf32> to vector<16xf32>
    %152 = vector.shape_cast %151 : vector<16xf32> to vector<16x1xf32>
    %153 = vector.broadcast %124 : vector<1x32xf32> to vector<16x32xf32>
    %154 = arith.mulf %74, %153 : vector<16x32xf32>
    %cst_51 = arith.constant dense<0.000000e+00> : vector<16xf32>
    %155 = vector.multi_reduction <add>, %154, %cst_51 [1] : vector<16x32xf32> to vector<16xf32>
    %156 = vector.shape_cast %155 : vector<16xf32> to vector<16x1xf32>
    %157 = arith.maximumf %152, %156 : vector<16x1xf32>
    %158 = arith.subf %152, %157 : vector<16x1xf32>
    %159 = math.exp %158 : vector<16x1xf32>
    %160 = arith.subf %156, %157 : vector<16x1xf32>
    %161 = math.exp %160 : vector<16x1xf32>
    %162 = arith.addf %159, %161 : vector<16x1xf32>
    %cst_52 = arith.constant 1.000000e+00 : f32
    %163 = vector.broadcast %cst_52 : f32 to vector<16x1xf32>
    %164 = arith.divf %163, %162 : vector<16x1xf32>
    %165 = arith.mulf %159, %164 : vector<16x1xf32>
    %166 = arith.mulf %161, %164 : vector<16x1xf32>
    %167 = vector.broadcast %165 : vector<16x1xf32> to vector<16x32xf32>
    %168 = arith.mulf %167, %20 : vector<16x32xf32>
    %169 = vector.broadcast %166 : vector<16x1xf32> to vector<16x32xf32>
    %170 = arith.mulf %169, %74 : vector<16x32xf32>
    %171 = arith.addf %168, %170 : vector<16x32xf32>
    %c0_53 = arith.constant 0 : index
    %c0_54 = arith.constant 0 : index
    %172 = vector.load %arg10[%c0_53, %c0_54] : memref<16x32xf32, #tpu.memory_space<vmem>>, vector<16x32xf32>
    tpu.vector_store %arg10[%c0_53, %c0_54], %171 {strides = array<i32>} : memref<16x32xf32, #tpu.memory_space<vmem>>, vector<16x32xf32>,
    %c0_55 = arith.constant 0 : index
    %173 = memref.load %arg8[%c0_55] : memref<2xf32, #tpu.memory_space<smem>>
    %c1 = arith.constant 1 : index
    %174 = memref.load %arg8[%c1] : memref<2xf32, #tpu.memory_space<smem>>
    %175 = vector.broadcast %173 : f32 to vector<16x1xf32>
    %176 = arith.mulf %59, %175 : vector<16x1xf32>
    %177 = vector.broadcast %174 : f32 to vector<16x1xf32>
    %178 = arith.mulf %62, %177 : vector<16x1xf32>
    %179 = arith.addf %176, %178 : vector<16x1xf32>
    %180 = vector.broadcast %173 : f32 to vector<16x1xf32>
    %181 = arith.mulf %113, %180 : vector<16x1xf32>
    %182 = vector.broadcast %174 : f32 to vector<16x1xf32>
    %183 = arith.mulf %116, %182 : vector<16x1xf32>
    %184 = arith.addf %181, %183 : vector<16x1xf32>
    %185 = arith.maximumf %179, %184 : vector<16x1xf32>
    %186 = arith.subf %179, %185 : vector<16x1xf32>
    %187 = math.exp %186 : vector<16x1xf32>
    %188 = arith.subf %184, %185 : vector<16x1xf32>
    %189 = math.exp %188 : vector<16x1xf32>
    %190 = arith.addf %187, %189 : vector<16x1xf32>
    %cst_56 = arith.constant 1.000000e+00 : f32
    %191 = vector.broadcast %cst_56 : f32 to vector<16x1xf32>
    %192 = arith.divf %191, %190 : vector<16x1xf32>
    %193 = arith.mulf %187, %192 : vector<16x1xf32>
    %194 = arith.mulf %189, %192 : vector<16x1xf32>
    %195 = vector.broadcast %173 : f32 to vector<16x1xf32>
    %196 = arith.mulf %65, %195 : vector<16x1xf32>
    %197 = vector.broadcast %174 : f32 to vector<16x1xf32>
    %198 = arith.mulf %68, %197 : vector<16x1xf32>
    %199 = arith.addf %196, %198 : vector<16x1xf32>
    %200 = vector.broadcast %173 : f32 to vector<16x1xf32>
    %201 = arith.mulf %119, %200 : vector<16x1xf32>
    %202 = vector.broadcast %174 : f32 to vector<16x1xf32>
    %203 = arith.mulf %122, %202 : vector<16x1xf32>
    %204 = arith.addf %201, %203 : vector<16x1xf32>
    %205 = arith.maximumf %199, %204 : vector<16x1xf32>
    %206 = arith.subf %199, %205 : vector<16x1xf32>
    %207 = math.exp %206 : vector<16x1xf32>
    %208 = arith.subf %204, %205 : vector<16x1xf32>
    %209 = math.exp %208 : vector<16x1xf32>
    %210 = arith.addf %207, %209 : vector<16x1xf32>
    %cst_57 = arith.constant 1.000000e+00 : f32
    %211 = vector.broadcast %cst_57 : f32 to vector<16x1xf32>
    %212 = arith.divf %211, %210 : vector<16x1xf32>
    %213 = arith.mulf %207, %212 : vector<16x1xf32>
    %214 = arith.mulf %209, %212 : vector<16x1xf32>
    %215 = arith.mulf %193, %59 : vector<16x1xf32>
    %216 = arith.mulf %194, %113 : vector<16x1xf32>
    %217 = arith.addf %215, %216 : vector<16x1xf32>
    %218 = arith.mulf %193, %62 : vector<16x1xf32>
    %219 = arith.mulf %194, %116 : vector<16x1xf32>
    %220 = arith.addf %218, %219 : vector<16x1xf32>
    %221 = arith.mulf %213, %65 : vector<16x1xf32>
    %222 = arith.mulf %214, %119 : vector<16x1xf32>
    %223 = arith.addf %221, %222 : vector<16x1xf32>
    %224 = arith.mulf %213, %68 : vector<16x1xf32>
    %225 = arith.mulf %214, %122 : vector<16x1xf32>
    %226 = arith.addf %224, %225 : vector<16x1xf32>
    %227 = tpu.concatenate %217, %220, %223, %226 in 1 : vector<16x1xf32>, vector<16x1xf32>, vector<16x1xf32>, vector<16x1xf32> -> vector<16x4xf32>
    %c0_58 = arith.constant 0 : index
    %c0_59 = arith.constant 0 : index
    %228 = vector.load %arg11[%c0_58, %c0_59] : memref<16x4xf32, #tpu.memory_space<vmem>>, vector<16x4xf32>
    tpu.vector_store %arg11[%c0_58, %c0_59], %227 {strides = array<i32>} : memref<16x4xf32, #tpu.memory_space<vmem>>, vector<16x4xf32>,
    return
  }
}

</mosaic_0001>

<bundles_post_ra>
// kernel: mix_spancmg_forward.1
= control target key start
LH: loop header
LB: loop body
LE: loop exit
PB: predicated region body
PF: predicated region fallthrough
CT: control target
= control target key end

     0   :  { %17 = vsyncpa [#allocation3], 0  ;;  %s2551_s0 = inlined_call_operand.hbm [shape: f32[16,64], index: 0, kind: input, shape index: {}]   ;;  %s2552_s1 = inlined_call_operand.hbm [shape: f32[32,16], index: 1, kind: input, shape index: {}]   ;;  %s2553_s2 = inlined_call_operand.hbm [shape: f32[32,16], index: 2, kind: input, shape index: {}]   ;;  %s2554_s3 = inlined_call_operand.hbm [shape: f32[64,32], index: 3, kind: input, shape index: {}]   ;;  %s2555_s4 = inlined_call_operand.hbm [shape: f32[16,32], index: 4, kind: input, shape index: {}]   ;;  %s2556_s5 = inlined_call_operand.hbm [shape: f32[32,32], index: 5, kind: input, shape index: {}]   ;;  %s2557_s6 = inlined_call_operand.hbm [shape: f32[1,16], index: 6, kind: input, shape index: {}]   ;;  %s2558_s7 = inlined_call_operand.hbm [shape: f32[1,32], index: 7, kind: input, shape index: {}]   ;;  %s2559_s8 = inlined_call_operand.hbm [shape: f32[2], index: 8, kind: input, shape index: {}]   ;;  %s2560_s9 = inlined_call_operand.hbm [shape: f32[16,16], index: 9, kind: output, shape index: {0}]   ;;  %s2561_s10 = inlined_call_operand.hbm [shape: f32[16,32], index: 10, kind: output, shape index: {1}]   ;;  %s2562_s11 = inlined_call_operand.hbm [shape: f32[16,4], index: 11, kind: output, shape index: {2}]  }
   0x1   :  { %18 = vsyncpa [#allocation7], 0 }
   0x2   :  { %19 = vsyncpa [#allocation10], 0 }
   0x3   :  { %20 = vsyncpa [#allocation13], 0 }
   0x4   :  { %21 = vsyncpa [#allocation16], 0 }
   0x5   :  { %22 = vsyncpa [#allocation5], 0 }
   0x6   :  { %23 = vsyncpa [#allocation4], 0 }
   0x7   :  { %24 = vsyncpa [#allocation20], 0  ;;  %s2003_s17 = smov [#allocation6]   ;;  %s2004_s19 = smov [#allocation9]  }
   0x8   :  { %s42_s18 = sshll.u32 %s2003_s17, 4  ;;  %s66_s20 = sshll.u32 %s2004_s19, 4  ;;  %s43_s18 = int_to_ptr.vmem [resolvable:$true] %s42_s18  ;;  %s2079_s20 = int_to_ptr.vmem [resolvable:$true] %s66_s20 }
   0x9   :  { %s1735_s23 = scalar_lea.hbm %s2552_s1, 512 }
   0xa   :  { %p1736_p0 = scmp.ne.s32.totalorder %s2552_s1, %s1735_s23  ;;  %p1739_p1 = scmp.lt.u32.totalorder %s1735_s23, %s2552_s1 }
   0xc   :  { %p1741_p2 = pnand %p1739_p1, %p1736_p0 }
   0xe   :  { %1744 = shalt.err (!%p1741_p2)
}
   0xf   :  { %s1745_s28 = scalar_lea.vmem %s43_s18, 512  ;;  %p1750_p4 = scmp.lt.s32.totalorder %s43_s18, %s43_s18 }
  0x10   :  { %p1746_p3 = scmp.ne.s32.totalorder %s43_s18, %s1745_s28  ;;  %p1751_p5 = scmp.lt.s32.totalorder %s1745_s28, %s1745_s28 }
  0x12   :  { %p1752_p6 = por %p1751_p5, %p1750_p4 }
  0x14   :  { %p1753_p7 = pnand %p1752_p6, %p1746_p3 }
  0x16   :  { %1756 = shalt.err (!%p1753_p7)
}
  0x17   :  { %s2005_s29 = smov 128   ;;  %s2006_s30 = smov 8  }
  0x18   :  { %48 = dma.hbm_to_vmem [thread:$0]  %s2552_s1, 512, %s43_s18, [#allocation7], %s2005_s29, %s2005_s29, %s2006_s30  }
  0x19   :  { %s1757_s16 = scalar_lea.hbm %s2554_s3, 1024 }
  0x1a   :  { %p1758_p8 = scmp.ne.s32.totalorder %s2554_s3, %s1757_s16  ;;  %p1761_p9 = scmp.lt.u32.totalorder %s1757_s16, %s2554_s3 }
  0x1c   :  { %p1763_p10 = pnand %p1761_p9, %p1758_p8 }
  0x1e   :  { %1766 = shalt.err (!%p1763_p10)
}
  0x1f   :  { %s1767_s23 = scalar_lea.vmem %s2079_s20, 1024  ;;  %p1772_p12 = scmp.lt.s32.totalorder %s2079_s20, %s2079_s20 }
  0x20   :  { %p1768_p11 = scmp.ne.s32.totalorder %s2079_s20, %s1767_s23  ;;  %p1773_p13 = scmp.lt.s32.totalorder %s1767_s23, %s1767_s23 }
  0x22   :  { %p1774_p0 = por %p1773_p13, %p1772_p12 }
  0x24   :  { %p1775_p1 = pnand %p1774_p0, %p1768_p11 }
  0x26   :  { %1778 = shalt.err (!%p1775_p1)
}
  0x27   :  { %72 = dma.hbm_to_vmem [thread:$0]  %s2554_s3, 1024, %s2079_s20, [#allocation10], %s2005_s29, %s2005_s29, %s2006_s30  }
  0x28   :  { %s2007_s24 = smov [#allocation12]   ;;  %s2008_s26 = smov [#allocation2]  }
  0x29   :  { %s90_s25 = sshll.u32 %s2007_s24, 4  ;;  %s30_s27 = sshll.u32 %s2008_s26, 4  ;;  %s91_s25 = int_to_ptr.vmem [resolvable:$true] %s90_s25  ;;  %s2116_s27 = int_to_ptr.vmem [resolvable:$true] %s30_s27 }
  0x2a   :  { %s1779_s13 = scalar_lea.hbm %s2556_s5, 512 }
  0x2b   :  { %p1780_p2 = scmp.ne.s32.totalorder %s2556_s5, %s1779_s13  ;;  %p1783_p3 = scmp.lt.u32.totalorder %s1779_s13, %s2556_s5 }
  0x2d   :  { %p1785_p4 = pnand %p1783_p3, %p1780_p2 }
  0x2f   :  { %1788 = shalt.err (!%p1785_p4)
}
  0x30   :  { %s1789_s3 = scalar_lea.vmem %s91_s25, 512  ;;  %p1794_p6 = scmp.lt.s32.totalorder %s91_s25, %s91_s25 }
  0x31   :  { %p1790_p5 = scmp.ne.s32.totalorder %s91_s25, %s1789_s3  ;;  %p1795_p7 = scmp.lt.s32.totalorder %s1789_s3, %s1789_s3 }
  0x33   :  { %p1796_p8 = por %p1795_p7, %p1794_p6 }
  0x35   :  { %p1797_p9 = pnand %p1796_p8, %p1790_p5 }
  0x37   :  { %1800 = shalt.err (!%p1797_p9)
}
  0x38   :  { %96 = dma.hbm_to_vmem [thread:$0]  %s2556_s5, 512, %s91_s25, [#allocation13], %s2005_s29, %s2005_s29, %s2006_s30  }
  0x39   :  { %s1801_s23 = scalar_lea.hbm %s2551_s0, 256 }
  0x3a   :  { %p1802_p10 = scmp.ne.s32.totalorder %s2551_s0, %s1801_s23  ;;  %p1805_p11 = scmp.lt.u32.totalorder %s1801_s23, %s2551_s0 }
  0x3c   :  { %p1807_p12 = pnand %p1805_p11, %p1802_p10 }
  0x3e   :  { %1810 = shalt.err (!%p1807_p12)
}
  0x3f   :  { %s1811_s28 = scalar_lea.vmem %s2116_s27, 256  ;;  %p1816_p0 = scmp.lt.s32.totalorder %s2116_s27, %s2116_s27 }
  0x40   :  { %p1812_p13 = scmp.ne.s32.totalorder %s2116_s27, %s1811_s28  ;;  %p1817_p1 = scmp.lt.s32.totalorder %s1811_s28, %s1811_s28 }
  0x42   :  { %p1818_p2 = por %p1817_p1, %p1816_p0 }
  0x44   :  { %p1819_p3 = pnand %p1818_p2, %p1812_p13 }
  0x46   :  { %1822 = shalt.err (!%p1819_p3)
}
  0x47   :  { %36 = dma.hbm_to_vmem [thread:$0]  %s2551_s0, 256, %s2116_s27, [#allocation3], %s2005_s29, %s2005_s29, %s2006_s30  }
  0x48   :  { %s2009_s12 = smov [#allocation8]   ;;  %s2010_s14 = smov [#allocation11]  }
  0x49   :  { %s54_s13 = sshll.u32 %s2009_s12, 4  ;;  %s78_s15 = sshll.u32 %s2010_s14, 4  ;;  %s55_s13 = int_to_ptr.vmem [resolvable:$true] %s54_s13  ;;  %s2153_s15 = int_to_ptr.vmem [resolvable:$true] %s78_s15 }
  0x4a   :  { %s1823_s3 = scalar_lea.hbm %s2553_s2, 512 }
  0x4b   :  { %p1824_p4 = scmp.ne.s32.totalorder %s2553_s2, %s1823_s3  ;;  %p1827_p5 = scmp.lt.u32.totalorder %s1823_s3, %s2553_s2 }
  0x4d   :  { %p1829_p6 = pnand %p1827_p5, %p1824_p4 }
  0x4f   :  { %1832 = shalt.err (!%p1829_p6)
}
  0x50   :  { %s1833_s0 = scalar_lea.vmem %s55_s13, 512  ;;  %p1838_p8 = scmp.lt.s32.totalorder %s55_s13, %s55_s13 }
  0x51   :  { %p1834_p7 = scmp.ne.s32.totalorder %s55_s13, %s1833_s0  ;;  %p1839_p9 = scmp.lt.s32.totalorder %s1833_s0, %s1833_s0 }
  0x53   :  { %p1840_p10 = por %p1839_p9, %p1838_p8 }
  0x55   :  { %p1841_p11 = pnand %p1840_p10, %p1834_p7 }
  0x57   :  { %1844 = shalt.err (!%p1841_p11)
}
  0x58   :  { %60 = dma.hbm_to_vmem [thread:$0]  %s2553_s2, 512, %s55_s13, [#allocation7], %s2005_s29, %s2005_s29, %s2006_s30  }
  0x59   :  { %s1845_s24 = scalar_lea.hbm %s2555_s4, 256 }
  0x5a   :  { %p1846_p12 = scmp.ne.s32.totalorder %s2555_s4, %s1845_s24  ;;  %p1849_p13 = scmp.lt.u32.totalorder %s1845_s24, %s2555_s4 }
  0x5c   :  { %p1851_p0 = pnand %p1849_p13, %p1846_p12 }
  0x5e   :  { %1854 = shalt.err (!%p1851_p0)
}
  0x5f   :  { %s1855_s12 = scalar_lea.vmem %s2153_s15, 256  ;;  %p1860_p2 = scmp.lt.s32.totalorder %s2153_s15, %s2153_s15 }
  0x60   :  { %p1856_p1 = scmp.ne.s32.totalorder %s2153_s15, %s1855_s12  ;;  %p1861_p3 = scmp.lt.s32.totalorder %s1855_s12, %s1855_s12 }
  0x62   :  { %p1862_p4 = por %p1861_p3, %p1860_p2 }
  0x64   :  { %p1863_p5 = pnand %p1862_p4, %p1856_p1 }
  0x66   :  { %1866 = shalt.err (!%p1863_p5)
}
  0x67   :  { %84 = dma.hbm_to_vmem [thread:$0]  %s2555_s4, 256, %s2153_s15, [#allocation10], %s2005_s29, %s2005_s29, %s2006_s30  }
  0x68   :  { %s2011_s14 = smov [#allocation14]   ;;  %s2012_s17 = smov [#allocation15]  }
  0x69   :  { %s103_s16 = sshll.u32 %s2011_s14, 4  ;;  %s113_s3 = sshll.u32 %s2012_s17, 4  ;;  %s104_s16 = int_to_ptr.vmem [resolvable:$true] %s103_s16  ;;  %s114_s3 = int_to_ptr.vmem [resolvable:$true] %s113_s3 }
  0x6a   :  { %s1867_s21 = scalar_lea.hbm %s2557_s6, 16 }
  0x6b   :  { %p1868_p6 = scmp.ne.s32.totalorder %s2557_s6, %s1867_s21  ;;  %p1871_p7 = scmp.lt.u32.totalorder %s1867_s21, %s2557_s6 }
  0x6d   :  { %p1873_p8 = pnand %p1871_p7, %p1868_p6 }
  0x6f   :  { %1876 = shalt.err (!%p1873_p8)
}
  0x70   :  { %s1877_s4 = scalar_lea.vmem %s104_s16, 16  ;;  %s1881_s15 = scalar_lea.vmem %s104_s16, 32 }
  0x71   :  { %p1878_p9 = scmp.ne.s32.totalorder %s104_s16, %s1877_s4  ;;  %p1882_p10 = scmp.lt.s32.totalorder %s104_s16, %s104_s16 }
  0x72   :  { %p1883_p11 = scmp.lt.s32.totalorder %s1881_s15, %s1877_s4 }
  0x74   :  { %p1884_p12 = por %p1883_p11, %p1882_p10 }
  0x76   :  { %p1885_p13 = pnand %p1884_p12, %p1878_p9 }
  0x78   :  { %1888 = shalt.err (!%p1885_p13)
}
  0x79   :  { %106 = dma.hbm_to_vmem [thread:$0]  %s2557_s6, 16, %s104_s16, [#allocation13]  }
  0x7a   :  { %s1889_s28 = scalar_lea.hbm %s2558_s7, 16 }
  0x7b   :  { %p1890_p0 = scmp.ne.s32.totalorder %s2558_s7, %s1889_s28  ;;  %p1893_p1 = scmp.lt.u32.totalorder %s1889_s28, %s2558_s7 }
  0x7d   :  { %p1895_p2 = pnand %p1893_p1, %p1890_p0 }
  0x7f   :  { %1898 = shalt.err (!%p1895_p2)
}
  0x80   :  { %s1899_s13 = scalar_lea.vmem %s114_s3, 16  ;;  %s1903_s14 = scalar_lea.vmem %s114_s3, 32 }
  0x81   :  { %p1900_p3 = scmp.ne.s32.totalorder %s114_s3, %s1899_s13  ;;  %p1904_p4 = scmp.lt.s32.totalorder %s114_s3, %s114_s3 }
  0x82   :  { %p1905_p5 = scmp.lt.s32.totalorder %s1903_s14, %s1899_s13 }
  0x84   :  { %p1906_p6 = por %p1905_p5, %p1904_p4 }
  0x86   :  { %p1907_p7 = pnand %p1906_p6, %p1900_p3 }
  0x88   :  { %1910 = shalt.err (!%p1907_p7)
}
  0x89   :  { %116 = dma.hbm_to_vmem [thread:$0]  %s2558_s7, 16, %s114_s3, [#allocation16]  }
  0x8a   :  { %s1911_s19 = scalar_lea.hbm %s2559_s8, 16 }
  0x8b   :  { %p1912_p8 = scmp.ne.s32.totalorder %s2559_s8, %s1911_s19  ;;  %p1915_p9 = scmp.lt.u32.totalorder %s1911_s19, %s2559_s8 }
  0x8d   :  { %p1917_p10 = pnand %p1915_p9, %p1912_p8 }
  0x8f   :  { %1920 = shalt.err (!%p1917_p10)
}
  0x90   :  { %s2013_s23 = smov [#allocation17]  }
  0x91   :  { %124 = dma.hbm_to_smem %s2559_s8, 16, %s2013_s23, [#allocation5]  }
  0x92   :  { %1987 = dma.done.wait [#allocation3], 256  }
  0x93   :  { %1988 = vsyncadd [#allocation3], 4294967040 }
  0x94   :  { %1989 = dma.done.wait [#allocation7], 1024  }
  0x95   :  { %1990 = vsyncadd [#allocation7], 4294966272 }
  0x96   :  { %1991 = dma.done.wait [#allocation10], 1280  }
  0x97   :  { %1992 = vsyncadd [#allocation10], 4294966016 }
  0x98   :  { %1993 = dma.done.wait [#allocation13], 528  }
  0x99   :  { %1994 = vsyncadd [#allocation13], 4294966768 }
  0x9a   :  { %1995 = dma.done.wait [#allocation16], 16  }
  0x9b   :  { %1996 = vsyncadd [#allocation16], 4294967280 }
  0x9c   :  { %1997 = dma.done.wait [#allocation5], 16  }
  0x9d   :  { %1998 = vsyncadd [#allocation5], 4294967280 }
  0x9e   :  { %152 = sfence }
  0x9f   :  { %v155_v0 = vld [vmem:[#allocation9] sm:$0xff]  ;;  %v156_v1 = vld [vmem:[#allocation9 + $0x8] sm:$0xff]  ;;  %v157_v2 = vld [vmem:[#allocation9 + $0x10] sm:$0xff]  ;;  %vm177_vm0 = vcmask 523264   ;;  %vm259_vm1 = vcmask 130048   ;;  %vm458_vm2 = vcmask 261120  }
  0xa0   :  { %v1567_v3 = vpack.c.bf16 %v156_v1, %v155_v0  ;;  %v158_v4 = vld [vmem:[#allocation9 + $0x18] sm:$0xff]  ;;  %v159_v6 = vld [vmem:[#allocation9 + $0x20] sm:$0xff]  ;;  %v160_v7 = vld [vmem:[#allocation9 + $0x28] sm:$0xff]  ;;  %s2014_s7 = smov 112   ;;  %s2015_s8 = smov 16   ;;  %vm1342_vm3 = vcmask 7168  }
  0xa1   :  { %v1571_v5 = vpack.c.bf16 %v158_v4, %v157_v2  ;;  %v153_v8 = vld [vmem:[#allocation2] sm:$0xff]  ;;  %v1575_v9 = vpack.c.bf16 %v160_v7, %v159_v6  ;;  %v162_v11 = vld [vmem:[#allocation9 + $0x38] sm:$0xff]  ;;  %v169_v14 = vld [vmem:[#allocation6] sm:$0xff]  ;;  %s1439_s3 = sld [smem:[#allocation17 + $0x1]]  ;;  %s1242_s1 = sld [smem:[#allocation17]]  ;;  %vm1345_vm4 = vcmask 15360  }
  0xa2   :  { %1568 = vmatprep.subr.bf16.mxu0 %v1567_v3  ;;  %1502 = vmatprep.mubr.msk.f32.mxu0 %vm177_vm0, %v153_v8  ;;  %v161_v10 = vld [vmem:[#allocation9 + $0x30] sm:$0xff]  ;;  %v154_v13 = vld [vmem:[#allocation2 + $0x8] sm:$0xff]  ;;  %v163_v15 = vld [vmem:[#allocation11] sm:$0xff]  ;;  %vm1348_vm5 = vcmask 23552   ;;  %s2016_s18 = smov [#allocation19]   ;;  %vm1351_vm6 = vcmask 31744  }
  0xa3   :  { %1570 = vmatpush3.bf16.msra.mxu0 %v1567_v3  ;;  %v1579_v12 = vpack.c.bf16 %v162_v11, %v161_v10  ;;  %1509 = vmatprep.mubr.msk.f32.mxu1 %vm259_vm1, %v169_v14  ;;  %v164_v16 = vld [vmem:[#allocation11 + $0x8] sm:$0xff]  ;;  %v2232_v22 = vld [vmem:[#allocation6 + $0x10] sm:$0xff]  ;;  %v2238_v23 = vld [vmem:[#allocation6 + $0x18] sm:$0xff]  ;;  %s1371_s24 = sshll.u32 %s2016_s18, 4  ;;  %s1372_s24 = int_to_ptr.vmem [resolvable:$true] %s1371_s24 }
  0xa4   :  { %1572 = vmatprep.subr.bf16.mxu0 %v1571_v5  ;;  %v1587_v20 = vpack.c.bf16 %v164_v16, %v163_v15  ;;  %v2230_v21 = vld [vmem:[#allocation6 + $0x8] sm:$0xff]  ;;  %v165_v24 = vld [vmem:[#allocation12] sm:$0xff]  ;;  %v166_v25 = vld [vmem:[#allocation12 + $0x8] sm:$0xff]  ;;  %s1921_s26 = scalar_lea.vmem %s1372_s24, 256  ;;  %p1926_p12 = scmp.lt.s32.totalorder %s1372_s24, %s1372_s24 }
  0xa5   :  { %v1591_v26 = vpack.c.bf16 %v166_v25, %v165_v24  ;;  %v175_v27 = vld [vmem:[#allocation8 + $0x10] sm:$0xff]  ;;  %v176_v29 = vld [vmem:[#allocation8 + $0x18] sm:$0xff]  ;;  %v167_v31 = vld [vmem:[#allocation12 + $0x10] sm:$0xff]  ;;  %p1922_p11 = scmp.ne.s32.totalorder %s1372_s24, %s1921_s26  ;;  %p1927_p13 = scmp.lt.s32.totalorder %s1921_s26, %s1921_s26 }
  0xa6   :  { %v919_v28 = vsel %vm259_vm1, %v175_v27, 0.0  ;;  %v922_v30 = vsel %vm259_vm1, %v176_v29, 0.0  ;;  %v168_v32 = vld [vmem:[#allocation12 + $0x18] sm:$0xff]  ;;  %v173_v44 = vld [vmem:[#allocation8] sm:$0xff] }
  0xa7   :  { %1574 = vmatpush3.bf16.msra.mxu0 %v1571_v5  ;;  %920 = vadd.xlane.f32.xlu1 %v919_v28  ;;  %v1595_v36 = vpack.c.bf16 %v168_v32, %v167_v31  ;;  %v631_v45 = vsel %vm259_vm1, %v173_v44, 0.0  ;;  %v174_v46 = vld [vmem:[#allocation8 + $0x8] sm:$0xff]  ;;  %p1928_p0 = por %p1927_p13, %p1926_p12 }
  0xa8   :  { %1576 = vmatprep.subr.bf16.mxu0 %v1575_v9  ;;  %632 = vadd.xlane.f32.xlu0 %v631_v45  ;;  %v634_v47 = vsel %vm259_vm1, %v174_v46, 0.0 }
  0xa9   :  { %p1929_p1 = pnand %p1928_p0, %p1922_p11 }
  0xab   :  { %1578 = vmatpush3.bf16.msra.mxu0 %v1575_v9  ;;  %923 = vadd.xlane.f32.xlu1 %v922_v30 }
  0xac   :  { %1580 = vmatprep.subr.bf16.mxu0 %v1579_v12  ;;  %635 = vadd.xlane.f32.xlu0 %v634_v47 }
  0xaf   :  { %1582 = vmatpush3.bf16.msra.mxu0 %v1579_v12 }
  0xb2   :  { %1503 = vmatmul.mubr.msk.f32.vlgmr.msra.gmra.mrb[0].mxu0 %vm177_vm0, %v154_v13 }
  0xb3   :  { %1543 = vmatprep.mubr.msk.f32.mxu0 %vm259_vm1, %v169_v14 }
 0x134   :  { %v921_v48 = vpop.xlane.xlu1 %920 }
 0x135   :  { %v633_v6 = vpop.xlane.xlu0 %632 }
 0x138   :  { %v924_v51 = vpop.xlane.xlu1 %923 }
 0x139   :  { %1631 = vrcp.f32 %v924_v51  ;;  %v636_v7 = vpop.xlane.xlu0 %635 }
 0x13a   :  { %1633 = vrcp.f32 %v921_v48 }
 0x13b   :  { %1635 = vrcp.f32 %v636_v7 }
 0x13c   :  { %1637 = vrcp.f32 %v633_v6 }
 0x143   :  { %v1632_v60 = vpop.eup %1631 }
 0x144   :  { %v1634_v61 = vpop.eup %1633 }
 0x145   :  { %v1636_v10 = vpop.eup %1635 }
 0x146   :  { %v1638_v11 = vpop.eup %1637 }
 0x185   :  { %v1504_v17 = vpop.f32.mrb[0].mxu0 }
 0x186   :  { %v250_v18 = vpop.f32.mrb[1].mxu0 }
 0x187   :  { %v1583_v19 = vpack.c.bf16 %v1504_v17, %v250_v18 }
 0x189   :  { %1584 = vmatprep.subr.bf16.mxu1 %v1583_v19 }
 0x18a   :  { %1586 = vmatpush3.bf16.msra.mxu1 %v1583_v19 }
 0x18b   :  { %1588 = vmatprep.subr.bf16.mxu1 %v1587_v20 }
 0x18d   :  { %1510 = vmatmul.mubr.msk.f32.vlgmr.msra.gmra.mrb[0].mxu1 %vm259_vm1, %v2230_v21 }
 0x18e   :  { %1512 = vmatprep.mubr.msk.f32.mxu1 %vm259_vm1, %v2232_v22  ;;  %1590 = vmatpush3.bf16.msra.mxu1 %v1587_v20 }
 0x18f   :  { %1592 = vmatprep.subr.bf16.mxu1 %v1591_v26 }
 0x191   :  { %1513 = vmatmul.mubr.msk.f32.gmra.mrb[2].mxu1 %vm259_vm1, %v2238_v23 }
 0x260   :  { %v2244_v33 = vpop.f32.mrb[0].mxu1 }
 0x261   :  { %v455_v34 = vmax.f32 %v2244_v33, 0.0  ;;  %v2247_v35 = vpop.f32.mrb[1].mxu1 }
 0x262   :  { %v454_v37 = vmax.f32 %v2247_v35, 0.0  ;;  %1519 = vmatprep.mubr.msk.f32.mxu1 %vm259_vm1, %v2247_v35 }
 0x263   :  { %1520 = vmatmul.mubr.msk.f32.vlgmr.msra.gmra.mrb[4].mxu1 %vm259_vm1, %v2244_v33 }
 0x264   :  { %v2254_v38 = vpop.f32.mrb[2].mxu1  ;;  %1594 = vmatpush3.bf16.msra.mxu1 %v1591_v26  ;;  %v1603_v39 = vpack.c.bf16 %v455_v34, %v454_v37 }
 0x265   :  { %v457_v40 = vmax.f32 %v2254_v38, 0.0  ;;  %v2257_v41 = vpop.f32.mrb[3].mxu1  ;;  %1596 = vmatprep.subr.bf16.mxu1 %v1595_v36 }
 0x266   :  { %v456_v42 = vmax.f32 %v2257_v41, 0.0  ;;  %1522 = vmatprep.mubr.msk.f32.mxu1 %vm259_vm1, %v2257_v41 }
 0x267   :  { %1523 = vmatmul.mubr.msk.f32.gmra.mrb[6].mxu1 %vm259_vm1, %v2254_v38 }
 0x268   :  { %1598 = vmatpush3.bf16.msra.mxu1 %v1595_v36  ;;  %1533 = vmatprep.mubr.msk.f32.mxu1 %vm458_vm2, %v454_v37  ;;  %v1611_v43 = vpack.c.bf16 %v457_v40, %v456_v42 }
 0x26a   :  { %1612 = vmatprep.subr.bf16.mxu1 %v1611_v43 }
 0x26b   :  { %1534 = vmatmul.mubr.msk.f32.vlgmr.msra.gmra.mrb[8].mxu1 %vm458_vm2, %v455_v34 }
 0x26c   :  { %1536 = vmatprep.mubr.msk.f32.mxu1 %vm458_vm2, %v456_v42  ;;  %1614 = vmatpush3.bf16.msra.mxu1 %v1611_v43 }
 0x26f   :  { %1537 = vmatmul.mubr.msk.f32.gmra.mrb[10].mxu1 %vm458_vm2, %v457_v40 }
 0x270   :  { %1564 = vmatprep.mubr.msk.f32.mxu1 %vm259_vm1, %v175_v27 }
 0x273   :  { %1565 = vmatmul.mubr.msk.f32.vlgmr.msra.gmra.mrb[12].mxu1 %vm259_vm1, %v176_v29 }
 0x336   :  { %v1521_v49 = vpop.f32.mrb[4].mxu1 }
 0x337   :  { %v435_v50 = vpop.f32.mrb[5].mxu1 }
 0x338   :  { %v1599_v52 = vpack.c.bf16 %v1521_v49, %v435_v50 }
 0x33a   :  { %1600 = vmatprep.subr.bf16.mxu0 %v1599_v52  ;;  %v1524_v53 = vpop.f32.mrb[6].mxu1 }
 0x33b   :  { %1602 = vmatpush3.bf16.msra.mxu0 %v1599_v52  ;;  %v445_v54 = vpop.f32.mrb[7].mxu1 }
 0x33c   :  { %1604 = vmatprep.subr.bf16.mxu0 %v1603_v39  ;;  %v1607_v55 = vpack.c.bf16 %v1524_v53, %v445_v54 }
 0x33e   :  { %v2272_v56 = vpop.f32.mrb[8].mxu1  ;;  %1544 = vmatmul.mubr.msk.f32.vlgmr.msra.gmra.mrb[2].mxu0 %vm259_vm1, %v2230_v21 }
 0x33f   :  { %v2276_v57 = vpop.f32.mrb[9].mxu1  ;;  %1606 = vmatpush3.bf16.msra.mxu0 %v1603_v39  ;;  %1550 = vmatprep.mubr.msk.f32.mxu0 %vm259_vm1, %v173_v44 }
 0x340   :  { %1608 = vmatprep.subr.bf16.mxu0 %v1607_v55 }
 0x342   :  { %1551 = vmatmul.mubr.msk.f32.vlgmr.msra.gmra.mrb[4].mxu0 %vm259_vm1, %v174_v46  ;;  %v2280_v58 = vpop.f32.mrb[10].mxu1 }
 0x343   :  { %v2282_v59 = vpop.f32.mrb[11].mxu1  ;;  %1610 = vmatpush3.bf16.msra.mxu0 %v1607_v55  ;;  %1557 = vmatprep.mubr.msk.f32.mxu0 %vm259_vm1, %v2232_v22 }
 0x346   :  { %v1566_v62 = vpop.f32.mrb[12].mxu1  ;;  %1558 = vmatmul.mubr.msk.f32.vlgmr.msra.gmra.mrb[6].mxu0 %vm259_vm1, %v2238_v23 }
 0x347   :  { %v2288_v63 = vmul.f32 %v1632_v60, %v1566_v62  ;;  %v999_v0 = vpop.f32.mrb[13].mxu1 }
 0x348   :  { %v2290_v1 = vmul.f32 %v1634_v61, %v999_v0 }
 0x349   :  { %v1011_v2 = vmul.f32 %v2288_v63, %v2288_v63 }
 0x34a   :  { %v1010_v3 = vmul.f32 %v2290_v1, %v2290_v1 }
 0x34b   :  { %v1015_v4 = vsel %vm259_vm1, %v1011_v2, 0.0 }
 0x34c   :  { %1016 = vadd.xlane.f32.xlu0 %v1015_v4  ;;  %v1012_v5 = vsel %vm259_vm1, %v1010_v3, 0.0 }
 0x34d   :  { %1013 = vadd.xlane.f32.xlu1 %v1012_v5 }
 0x3d9   :  { %v1017_v24 = vpop.xlane.xlu0 %1016 }
 0x3da   :  { %v1014_v20 = vpop.xlane.xlu1 %1013  ;;  %v1019_v25 = vmax.f32 %v1017_v24, 1e-24 }
 0x3db   :  { %v1018_v23 = vmax.f32 %v1014_v20, 1e-24 }
 0x3dd   :  { %1639 = vrsqrt.f32 %v1018_v23 }
 0x3de   :  { %1641 = vrsqrt.f32 %v1019_v25 }
 0x3e7   :  { %v1640_v26 = vpop.eup %1639 }
 0x3e8   :  { %v1040_v27 = vmul.f32 %v1640_v26, %v2290_v1  ;;  %v1642_v28 = vpop.eup %1641 }
 0x3e9   :  { %v1041_v30 = vmul.f32 %v1642_v28, %v2288_v63 }
 0x3ea   :  { %v1433_v31 = vmul.f32 -1.442695, %v1040_v27 }
 0x3eb   :  { %v1434_v36 = vmul.f32 -1.442695, %v1041_v30 }
 0x3ec   :  { %1643 = vpow2.f32 %v1433_v31 }
 0x3f6   :  { %v1644_v45 = vpop.eup %1643 }
 0x3f7   :  { %v1048_v50 = vadd.f32 1.0, %v1644_v45 }
 0x411   :  { %v2298_v8 = vpop.f32.mrb[2].mxu0 }
 0x412   :  { %v2300_v9 = vpop.f32.mrb[3].mxu0 }
 0x415   :  { %v1552_v12 = vpop.f32.mrb[4].mxu0 }
 0x416   :  { %v2302_v13 = vmul.f32 %v1636_v10, %v1552_v12  ;;  %v711_v14 = vpop.f32.mrb[5].mxu0 }
 0x417   :  { %v2304_v15 = vmul.f32 %v1638_v11, %v711_v14 }
 0x418   :  { %v723_v16 = vmul.f32 %v2302_v13, %v2302_v13 }
 0x419   :  { %v722_v17 = vmul.f32 %v2304_v15, %v2304_v15 }
 0x41a   :  { %738 = vrot.lane.b32.xlu1 %v723_v16, %s2014_s7  ;;  %v727_v19 = vsel %vm259_vm1, %v723_v16, 0.0 }
 0x41b   :  { %736 = vrot.lane.b32.xlu0 %v722_v17, %s2014_s7  ;;  %v724_v18 = vsel %vm259_vm1, %v722_v17, 0.0 }
 0x43a   :  { %725 = vadd.xlane.f32.xlu0 %v724_v18 }
 0x43e   :  { %728 = vadd.xlane.f32.xlu1 %v727_v19 }
 0x44f   :  { %1026 = vrot.lane.b32.xlu1 %v1011_v2, %s2014_s7 }
 0x450   :  { %1024 = vrot.lane.b32.xlu0 %v1010_v3, %s2014_s7 }
 0x48c   :  { %v739_v21 = vpop.permute.xlu1 %738 }
 0x48d   :  { %v745_v22 = vsel %vm259_vm1, %v739_v21, 0.0  ;;  %v737_v29 = vpop.permute.xlu0 %736 }
 0x48e   :  { %746 = vadd.xlane.f32.xlu0 %v745_v22  ;;  %v742_v47 = vsel %vm259_vm1, %v737_v29, 0.0 }
 0x4c7   :  { %v726_v32 = vpop.xlane.xlu0 %725 }
 0x4c8   :  { %v730_v34 = vmax.f32 %v726_v32, 1e-24 }
 0x4ca   :  { %1645 = vrsqrt.f32 %v730_v34 }
 0x4cb   :  { %v1025_v37 = vpop.permute.xlu0 %1024  ;;  %v729_v39 = vpop.xlane.xlu1 %728  ;;  %1647 = vpow2.f32 %v1434_v36 }
 0x4cc   :  { %v731_v40 = vmax.f32 %v729_v39, 1e-24  ;;  %v1030_v42 = vsel %vm259_vm1, %v1025_v37, 0.0 }
 0x4cd   :  { %1031 = vadd.xlane.f32.xlu0 %v1030_v42 }
 0x4ce   :  { %1649 = vrsqrt.f32 %v731_v40 }
 0x4cf   :  { %v1027_v43 = vpop.permute.xlu1 %1026 }
 0x4d0   :  { %v1033_v44 = vsel %vm259_vm1, %v1027_v43, 0.0 }
 0x4d1   :  { %1034 = vadd.xlane.f32.xlu1 %v1033_v44 }
 0x4d4   :  { %v1646_v46 = vpop.eup %1645 }
 0x4d5   :  { %v752_v48 = vmul.f32 %v1646_v46, %v2304_v15  ;;  %743 = vadd.xlane.f32.xlu1 %v742_v47  ;;  %v1648_v49 = vpop.eup %1647 }
 0x4d6   :  { %v1049_v54 = vadd.f32 1.0, %v1648_v49 }
 0x4d7   :  { %v1425_v51 = vmul.f32 -1.442695, %v752_v48 }
 0x4d8   :  { %v1650_v52 = vpop.eup %1649 }
 0x4d9   :  { %1651 = vpow2.f32 %v1425_v51  ;;  %v753_v53 = vmul.f32 %v1650_v52, %v2302_v13 }
 0x4da   :  { %1653 = vrcp.f32 %v1048_v50 }
 0x4db   :  { %v1426_v55 = vmul.f32 -1.442695, %v753_v53 }
 0x4dd   :  { %1655 = vpow2.f32 %v1426_v55 }
 0x4de   :  { %1657 = vrcp.f32 %v1049_v54  ;;  %v2358_v54 = vpop.f32.mrb[6].mxu0 }
 0x4df   :  { %v2360_v55 = vpop.f32.mrb[7].mxu0 }
 0x4e3   :  { %v1652_v60 = vpop.eup %1651 }
 0x4e4   :  { %v760_v61 = vadd.f32 1.0, %v1652_v60  ;;  %v2324_v62 = vpop.eup %1653 }
 0x4e6   :  { %1659 = vrcp.f32 %v760_v61  ;;  %1078 = vrot.lane.b32.xlu1 %v2324_v62, %s2015_s8 }
 0x4e7   :  { %v1656_v0 = vpop.eup %1655 }
 0x4e8   :  { %v761_v2 = vadd.f32 1.0, %v1656_v0  ;;  %v2328_v3 = vpop.eup %1657 }
 0x4ea   :  { %1661 = vrcp.f32 %v761_v2  ;;  %1080 = vrot.lane.b32.xlu1 %v2328_v3, %s2015_s8 }
 0x4f0   :  { %v1660_v4 = vpop.eup %1659 }
 0x4f1   :  { %v2333_v5 = vmul.f32 %v1660_v4, %v2276_v57 }
 0x4f3   :  { %v782_v53 = vsel %vm259_vm1, %v2333_v5, 0.0 }
 0x4f4   :  { %v1662_v6 = vpop.eup %1661 }
 0x4f5   :  { %v781_v7 = vmul.f32 %v1662_v6, %v2272_v56 }
 0x4f7   :  { %v785_v52 = vsel %vm259_vm1, %v781_v7, 0.0 }
 0x51b   :  { %v747_v10 = vpop.xlane.xlu0 %746 }
 0x51c   :  { %v749_v11 = vmax.f32 %v747_v10, 1e-24 }
 0x51e   :  { %1663 = vrsqrt.f32 %v749_v11 }
 0x528   :  { %v1664_v12 = vpop.eup %1663 }
 0x529   :  { %v767_v14 = vmul.f32 %v1664_v12, %v2302_v13  ;;  %v1068_v12 = vmul.f32 %v2324_v62, %v2282_v59  ;;  %v1438_v62 = vld [vmem:[#allocation15] ss:$0 sm:$0xff] }
 0x52b   :  { %v1428_v16 = vmul.f32 -1.442695, %v767_v14  ;;  %v1069_v14 = vmul.f32 %v2328_v3, %v2280_v58 }
 0x52d   :  { %1665 = vpow2.f32 %v1428_v16  ;;  %v1070_v16 = vsel %vm259_vm1, %v1068_v12, 0.0 }
 0x537   :  { %v1666_v17 = vpop.eup %1665 }
 0x538   :  { %v775_v18 = vadd.f32 1.0, %v1666_v17  ;;  %v1073_v17 = vsel %vm259_vm1, %v1069_v14, 0.0 }
 0x53a   :  { %1667 = vrcp.f32 %v775_v18 }
 0x544   :  { %v1668_v19 = vpop.eup %1667 }
 0x545   :  { %v2338_v20 = vmul.f32 %v1668_v19, %v2272_v56 }
 0x55a   :  { %v1032_v21 = vpop.xlane.xlu0 %1031 }
 0x55b   :  { %v1036_v22 = vmax.f32 %v1032_v21, 1e-24 }
 0x55d   :  { %1669 = vrsqrt.f32 %v1036_v22  ;;  %v1202_v22 = vmul.f32 %v1438_v62, %v2360_v55 }
 0x55e   :  { %v1035_v23 = vpop.xlane.xlu1 %1034 }
 0x55f   :  { %v1037_v24 = vmax.f32 %v1035_v23, 1e-24 }
 0x561   :  { %1671 = vrsqrt.f32 %v1037_v24  ;;  %v1204_v24 = vsel %vm458_vm2, %v1202_v22, 0.0  ;;  %v1247_v22 = vstv %s1439_s3 }
 0x562   :  { %v744_v25 = vpop.xlane.xlu1 %743 }
 0x563   :  { %v748_v26 = vmax.f32 %v744_v25, 1e-24 }
 0x565   :  { %1673 = vrsqrt.f32 %v748_v26 }
 0x566   :  { %v1079_v43 = vpop.permute.xlu1 %1078 }
 0x567   :  { %v1670_v27 = vpop.eup %1669  ;;  %v1084_v48 = vmul.f32 %v1079_v43, %v2282_v59  ;;  %v1437_v43 = vld [vmem:[#allocation14] ss:$0 sm:$0xff] }
 0x568   :  { %v1054_v13 = vmul.f32 %v1670_v27, %v2290_v1 }
 0x56a   :  { %v1435_v28 = vmul.f32 -1.442695, %v1054_v13  ;;  %v1081_v46 = vpop.permute.xlu1 %1080 }
 0x56b   :  { %v1672_v29 = vpop.eup %1671 }
 0x56c   :  { %1675 = vpow2.f32 %v1435_v28  ;;  %v1055_v30 = vmul.f32 %v1672_v29, %v2288_v63  ;;  %v1085_v63 = vmul.f32 %v2280_v58, %v1081_v46  ;;  %v1140_v46 = vmul.f32 %v1437_v43, %v2247_v35 }
 0x56e   :  { %v1436_v31 = vmul.f32 -1.442695, %v1055_v30 }
 0x56f   :  { %v1674_v32 = vpop.eup %1673 }
 0x570   :  { %1677 = vpow2.f32 %v1436_v31  ;;  %v766_v34 = vmul.f32 %v1674_v32, %v2304_v15 }
 0x572   :  { %v1427_v36 = vmul.f32 -1.442695, %v766_v34 }
 0x574   :  { %1679 = vpow2.f32 %v1427_v36 }
 0x576   :  { %v1676_v37 = vpop.eup %1675 }
 0x577   :  { %v1062_v39 = vadd.f32 1.0, %v1676_v37  ;;  %v1195_v37 = vmul.f32 %v2298_v8, %v1438_v62 }
 0x579   :  { %1681 = vrcp.f32 %v1062_v39 }
 0x57a   :  { %v1678_v40 = vpop.eup %1677 }
 0x57b   :  { %v1063_v42 = vadd.f32 1.0, %v1678_v40 }
 0x57d   :  { %1683 = vrcp.f32 %v1063_v42 }
 0x57e   :  { %v1680_v1 = vpop.eup %1679 }
 0x57f   :  { %v774_v44 = vadd.f32 1.0, %v1680_v1  ;;  %v1203_v1 = vmul.f32 %v2358_v54, %v1438_v62 }
 0x581   :  { %1685 = vrcp.f32 %v774_v44 }
 0x583   :  { %v1682_v45 = vpop.eup %1681 }
 0x584   :  { %1118 = vrot.lane.b32.xlu1 %v1682_v45, %s2014_s7  ;;  %v1100_v51 = vmul.f32 %v1682_v45, %v2282_v59  ;;  %v1199_v45 = vsel %vm458_vm2, %v1195_v37, 0.0 }
 0x587   :  { %v1684_v47 = vpop.eup %1683 }
 0x588   :  { %1120 = vrot.lane.b32.xlu0 %v1684_v47, %s2014_s7  ;;  %1090 = vrot.lane.b32.xlu1 %v1085_v63, %s2014_s7  ;;  %v1101_v15 = vmul.f32 %v1684_v47, %v2280_v58  ;;  %v1142_v63 = vsel %vm259_vm1, %v1140_v46, 0.0  ;;  %v1148_v47 = vmul.f32 %v1437_v43, %v2257_v41 }
 0x58b   :  { %v1686_v49 = vpop.eup %1685 }
 0x58c   :  { %1088 = vrot.lane.b32.xlu0 %v1084_v48, %s2014_s7  ;;  %792 = vrot.lane.b32.xlu1 %v1662_v6, %s2015_s8  ;;  %v812_v50 = vmul.f32 %v1686_v49, %v2276_v57  ;;  %v1150_v48 = vsel %vm259_vm1, %v1148_v47, 0.0 }
 0x590   :  { %1104 = vrot.lane.b32.xlu0 %v1100_v51, %s2014_s7  ;;  %v1141_v51 = vmul.f32 %v2244_v33, %v1437_v43 }
 0x594   :  { %790 = vrot.lane.b32.xlu0 %v1660_v4, %s2015_s8 }
 0x5b0   :  { %786 = vadd.xlane.f32.xlu1 %v785_v52  ;;  %v1145_v52 = vsel %vm259_vm1, %v1141_v51, 0.0 }
 0x5b3   :  { %783 = vadd.xlane.f32.xlu0 %v782_v53  ;;  %v1149_v53 = vmul.f32 %v2254_v38, %v1437_v43 }
 0x5c1   :  { %830 = vrot.lane.b32.xlu1 %v1686_v49, %s2014_s7 }
 0x5c9   :  { %832 = vrot.lane.b32.xlu0 %v1668_v19, %s2014_s7 }
 0x5f6   :  { %v1119_v60 = vpop.permute.xlu1 %1118 }
 0x5fa   :  { %v1121_v61 = vpop.permute.xlu0 %1120  ;;  %v1091_v0 = vpop.permute.xlu1 %1090 }
 0x5fb   :  { %v1125_v2 = vmul.f32 %v2280_v58, %v1121_v61  ;;  %v1097_v19 = vsel %vm259_vm1, %v1091_v0, 0.0  ;;  %v1194_v58 = vmul.f32 %v1438_v62, %v2300_v9 }
 0x5fd   :  { %v1196_v23 = vsel %vm458_vm2, %v1194_v58, 0.0  ;;  %v1129_v42 = vsel %vm259_vm1, %v1125_v2, 0.0 }
 0x5fe   :  { %v1089_v4 = vpop.permute.xlu0 %1088  ;;  %v793_v6 = vpop.permute.xlu1 %792 }
 0x5ff   :  { %v797_v7 = vmul.f32 %v2272_v56, %v793_v6  ;;  %v1094_v18 = vsel %vm259_vm1, %v1089_v4, 0.0 }
 0x601   :  { %802 = vrot.lane.b32.xlu1 %v797_v7, %s2014_s7 }
 0x602   :  { %v1105_v5 = vpop.permute.xlu0 %1104 }
 0x603   :  { %v1110_v21 = vsel %vm259_vm1, %v1105_v5, 0.0 }
 0x605   :  { %818 = vrot.lane.b32.xlu1 %v2338_v20, %s2014_s7  ;;  %v1124_v20 = vmul.f32 %v1119_v60, %v2282_v59  ;;  %v1153_v60 = vsel %vm259_vm1, %v1149_v53, 0.0 }
 0x606   :  { %v791_v10 = vpop.permute.xlu0 %790 }
 0x607   :  { %v796_v11 = vmul.f32 %v791_v10, %v2276_v57  ;;  %v1126_v3 = vsel %vm259_vm1, %v1124_v20, 0.0 }
 0x609   :  { %800 = vrot.lane.b32.xlu0 %v796_v11, %s2014_s7  ;;  %1106 = vrot.lane.b32.xlu1 %v1101_v15, %s2014_s7 }
 0x60d   :  { %816 = vrot.lane.b32.xlu0 %v812_v50, %s2014_s7 }
 0x62c   :  { %1071 = vadd.xlane.f32.xlu0 %v1070_v16 }
 0x62d   :  { %1074 = vadd.xlane.f32.xlu1 %v1073_v17 }
 0x630   :  { %1095 = vadd.xlane.f32.xlu0 %v1094_v18 }
 0x631   :  { %1098 = vadd.xlane.f32.xlu1 %v1097_v19 }
 0x634   :  { %1111 = vadd.xlane.f32.xlu0 %v1110_v21 }
 0x638   :  { %1127 = vadd.xlane.f32.xlu0 %v1126_v3 }
 0x63c   :  { %1197 = vadd.xlane.f32.xlu0 %v1196_v23 }
 0x63d   :  { %v2388_v25 = vpop.xlane.xlu1 %786 }
 0x640   :  { %1205 = vadd.xlane.f32.xlu0 %v1204_v24  ;;  %v2390_v26 = vpop.xlane.xlu0 %783 }
 0x641   :  { %v831_v59 = vpop.permute.xlu1 %830 }
 0x642   :  { %v836_v39 = vmul.f32 %v831_v59, %v2276_v57  ;;  %v1207_v57 = vsel %vm458_vm2, %v1203_v1, 0.0 }
 0x644   :  { %v833_v13 = vpop.permute.xlu0 %832  ;;  %v838_v44 = vsel %vm259_vm1, %v836_v39, 0.0 }
 0x645   :  { %v837_v15 = vmul.f32 %v2272_v56, %v833_v13 }
 0x647   :  { %v841_v50 = vsel %vm259_vm1, %v837_v15, 0.0 }
 0x673   :  { %v803_v27 = vpop.permute.xlu1 %802 }
 0x674   :  { %v809_v49 = vsel %vm259_vm1, %v803_v27, 0.0  ;;  %v1244_v27 = vstv %s1242_s1 }
 0x677   :  { %v819_v28 = vpop.permute.xlu1 %818 }
 0x678   :  { %v825_v29 = vsel %vm259_vm1, %v819_v28, 0.0 }
 0x679   :  { %826 = vadd.xlane.f32.xlu0 %v825_v29 }
 0x67b   :  { %v801_v30 = vpop.permute.xlu0 %800  ;;  %v1107_v31 = vpop.permute.xlu1 %1106 }
 0x67c   :  { %v806_v32 = vsel %vm259_vm1, %v801_v30, 0.0  ;;  %v1113_v34 = vsel %vm259_vm1, %v1107_v31, 0.0 }
 0x67d   :  { %807 = vadd.xlane.f32.xlu0 %v806_v32  ;;  %1114 = vadd.xlane.f32.xlu1 %v1113_v34 }
 0x67f   :  { %v817_v36 = vpop.permute.xlu0 %816 }
 0x680   :  { %v822_v40 = vsel %vm259_vm1, %v817_v36, 0.0 }
 0x681   :  { %823 = vadd.xlane.f32.xlu0 %v822_v40  ;;  %1130 = vadd.xlane.f32.xlu1 %v1129_v42 }
 0x685   :  { %839 = vadd.xlane.f32.xlu0 %v838_v44  ;;  %1200 = vadd.xlane.f32.xlu1 %v1199_v45 }
 0x689   :  { %1143 = vadd.xlane.f32.xlu0 %v1142_v63  ;;  %1208 = vadd.xlane.f32.xlu1 %v1207_v57 }
 0x68d   :  { %1151 = vadd.xlane.f32.xlu0 %v1150_v48  ;;  %810 = vadd.xlane.f32.xlu1 %v809_v49 }
 0x691   :  { %842 = vadd.xlane.f32.xlu1 %v841_v50 }
 0x695   :  { %1146 = vadd.xlane.f32.xlu1 %v1145_v52 }
 0x699   :  { %1154 = vadd.xlane.f32.xlu1 %v1153_v60 }
 0x6b9   :  { %v2414_v56 = vpop.xlane.xlu0 %1071 }
 0x6ba   :  { %v2425_v3 = vpop.xlane.xlu1 %1074  ;;  %v1252_v28 = vmul.f32 %v1244_v27, %v2414_v56 }
 0x6bd   :  { %v2416_v61 = vpop.xlane.xlu0 %1095 }
 0x6be   :  { %v2427_v23 = vpop.xlane.xlu1 %1098  ;;  %v1254_v59 = vmul.f32 %v1247_v22, %v2416_v61 }
 0x6bf   :  { %v1255_v51 = vmul.f32 %v1247_v22, %v2427_v23 }
 0x6c0   :  { %v1256_v30 = vadd.f32 %v1254_v59, %v1252_v28 }
 0x6c1   :  { %v2418_v0 = vpop.xlane.xlu0 %1111 }
 0x6c2   :  { %v1288_v42 = vmul.f32 %v1244_v27, %v2418_v0 }
 0x6c5   :  { %v2420_v2 = vpop.xlane.xlu0 %1127 }
 0x6c6   :  { %v1290_v37 = vmul.f32 %v1247_v22, %v2420_v2 }
 0x6c8   :  { %v1292_v57 = vadd.f32 %v1290_v37, %v1288_v42 }
 0x6c9   :  { %v1198_v4 = vpop.xlane.xlu0 %1197 }
 0x6cd   :  { %v1206_v6 = vpop.xlane.xlu0 %1205 }
 0x6ce   :  { %v1210_v7 = vmax.f32 %v1198_v4, %v1206_v6 }
 0x6d0   :  { %v1212_v5 = vsub.f32 %v1198_v4, %v1210_v7  ;;  %v1218_v10 = vsub.f32 %v1206_v6, %v1210_v7  ;;  %v1253_v6 = vmul.f32 %v1244_v27, %v2425_v3 }
 0x6d2   :  { %v1214_v11 = vmul.f32 1.442695, %v1212_v5  ;;  %v1220_v12 = vmul.f32 1.442695, %v1218_v10 }
 0x6d4   :  { %1687 = vpow2.f32 %v1214_v11 }
 0x6d5   :  { %1689 = vpow2.f32 %v1220_v12 }
 0x6de   :  { %v1688_v14 = vpop.eup %1687 }
 0x6df   :  { %v1690_v16 = vpop.eup %1689 }
 0x6e0   :  { %v1224_v17 = vadd.f32 %v1690_v16, %v1688_v14 }
 0x6e2   :  { %1691 = vrcp.f32 %v1224_v17  ;;  %v1257_v17 = vadd.f32 %v1255_v51, %v1253_v6 }
 0x6ec   :  { %v1692_v18 = vpop.eup %1691 }
 0x6ed   :  { %v1230_v19 = vmul.f32 %v1692_v18, %v1688_v14  ;;  %v1232_v20 = vmul.f32 %v1692_v18, %v1690_v16  ;;  %v1246_v16 = vmul.f32 %v1244_v27, %v2388_v25 }
 0x6ef   :  { %v1234_v21 = vmul.f32 %v1230_v19, %v2300_v9  ;;  %v1236_v62 = vmul.f32 %v1232_v20, %v2360_v55  ;;  %v1245_v55 = vmul.f32 %v1244_v27, %v2390_v26 }
 0x6f1   :  { %v1238_v58 = vadd.f32 %v1236_v62, %v1234_v21 }
 0x6f3   :  { %1240 = vst.msk [vmem:[#allocation19] sm:$0xff] %vm458_vm2, %v1238_v58 }
 0x706   :  { %v2429_v24 = vpop.xlane.xlu0 %826 }
 0x707   :  { %v1283_v58 = vmul.f32 %v1244_v27, %v2429_v24 }
 0x70a   :  { %v2432_v13 = vpop.xlane.xlu0 %807  ;;  %v2434_v9 = vpop.xlane.xlu1 %1114 }
 0x70b   :  { %v1248_v29 = vmul.f32 %v1247_v22, %v2432_v13  ;;  %v1289_v59 = vmul.f32 %v1244_v27, %v2434_v9 }
 0x70d   :  { %v1250_v31 = vadd.f32 %v1248_v29, %v1245_v55 }
 0x70e   :  { %v2439_v32 = vpop.xlane.xlu0 %823  ;;  %v2441_v34 = vpop.xlane.xlu1 %1130 }
 0x70f   :  { %v1258_v36 = vmax.f32 %v1250_v31, %v1256_v30  ;;  %v1282_v46 = vmul.f32 %v1244_v27, %v2439_v32  ;;  %v1291_v20 = vmul.f32 %v1247_v22, %v2441_v34 }
 0x711   :  { %v1260_v39 = vsub.f32 %v1250_v31, %v1258_v36  ;;  %v1266_v40 = vsub.f32 %v1256_v30, %v1258_v36  ;;  %v1293_v42 = vadd.f32 %v1291_v20, %v1289_v59 }
 0x712   :  { %v2445_v43 = vpop.xlane.xlu0 %839  ;;  %v1201_v1 = vpop.xlane.xlu1 %1200 }
 0x713   :  { %v1262_v44 = vmul.f32 1.442695, %v1260_v39  ;;  %v1268_v45 = vmul.f32 1.442695, %v1266_v40  ;;  %v1284_v63 = vmul.f32 %v1247_v22, %v2445_v43 }
 0x715   :  { %1693 = vpow2.f32 %v1262_v44  ;;  %v1286_v47 = vadd.f32 %v1284_v63, %v1282_v46 }
 0x716   :  { %1695 = vpow2.f32 %v1268_v45  ;;  %v1144_v15 = vpop.xlane.xlu0 %1143  ;;  %v1209_v48 = vpop.xlane.xlu1 %1208 }
 0x717   :  { %v1294_v49 = vmax.f32 %v1286_v47, %v1292_v57  ;;  %v1211_v50 = vmax.f32 %v1201_v1, %v1209_v48 }
 0x719   :  { %v1296_v52 = vsub.f32 %v1286_v47, %v1294_v49  ;;  %v1302_v53 = vsub.f32 %v1292_v57, %v1294_v49  ;;  %v1213_v60 = vsub.f32 %v1201_v1, %v1211_v50  ;;  %v1219_v4 = vsub.f32 %v1209_v48, %v1211_v50 }
 0x71a   :  { %v1152_v7 = vpop.xlane.xlu0 %1151  ;;  %v2451_v5 = vpop.xlane.xlu1 %810 }
 0x71b   :  { %v1298_v10 = vmul.f32 1.442695, %v1296_v52  ;;  %v1304_v11 = vmul.f32 1.442695, %v1302_v53  ;;  %v1216_v12 = vmul.f32 1.442695, %v1213_v60  ;;  %v1156_v14 = vmax.f32 %v1144_v15, %v1152_v7 }
 0x71c   :  { %v1222_v18 = vmul.f32 1.442695, %v1219_v4  ;;  %v1249_v19 = vmul.f32 %v1247_v22, %v2451_v5 }
 0x71d   :  { %1697 = vpow2.f32 %v1298_v10  ;;  %v1158_v21 = vsub.f32 %v1144_v15, %v1156_v14  ;;  %v1164_v62 = vsub.f32 %v1152_v7, %v1156_v14 }
 0x71e   :  { %1699 = vpow2.f32 %v1304_v11  ;;  %v1251_v55 = vadd.f32 %v1249_v19, %v1246_v16  ;;  %v2458_v28 = vpop.xlane.xlu1 %842 }
 0x71f   :  { %v1694_v29 = vpop.eup %1693  ;;  %1701 = vpow2.f32 %v1216_v12  ;;  %v1160_v30 = vmul.f32 1.442695, %v1158_v21  ;;  %v1166_v31 = vmul.f32 1.442695, %v1164_v62  ;;  %v1285_v36 = vmul.f32 %v1247_v22, %v2458_v28 }
 0x720   :  { %v1696_v37 = vpop.eup %1695  ;;  %1703 = vpow2.f32 %v1222_v18  ;;  %v1259_v39 = vmax.f32 %v1251_v55, %v1257_v17 }
 0x721   :  { %v1272_v40 = vadd.f32 %v1696_v37, %v1694_v29  ;;  %1705 = vpow2.f32 %v1160_v30  ;;  %v1287_v1 = vadd.f32 %v1285_v36, %v1283_v58 }
 0x722   :  { %1707 = vpow2.f32 %v1166_v31  ;;  %v1261_v44 = vsub.f32 %v1251_v55, %v1259_v39  ;;  %v1267_v27 = vsub.f32 %v1257_v17, %v1259_v39  ;;  %v1147_v45 = vpop.xlane.xlu1 %1146 }
 0x723   :  { %1709 = vrcp.f32 %v1272_v40  ;;  %v1295_v46 = vmax.f32 %v1287_v1, %v1293_v42 }
 0x724   :  { %v1264_v63 = vmul.f32 1.442695, %v1261_v44  ;;  %v1270_v57 = vmul.f32 1.442695, %v1267_v27 }
 0x725   :  { %v1297_v47 = vsub.f32 %v1287_v1, %v1295_v46  ;;  %v1303_v15 = vsub.f32 %v1293_v42, %v1295_v46 }
 0x726   :  { %1711 = vpow2.f32 %v1264_v63  ;;  %v1155_v48 = vpop.xlane.xlu1 %1154 }
 0x727   :  { %v1698_v22 = vpop.eup %1697  ;;  %1713 = vpow2.f32 %v1270_v57  ;;  %v1300_v49 = vmul.f32 1.442695, %v1297_v47  ;;  %v1306_v50 = vmul.f32 1.442695, %v1303_v15  ;;  %v1157_v51 = vmax.f32 %v1147_v45, %v1155_v48 }
 0x728   :  { %v1700_v52 = vpop.eup %1699 }
 0x729   :  { %v1702_v53 = vpop.eup %1701  ;;  %v1308_v60 = vadd.f32 %v1700_v52, %v1698_v22  ;;  %1715 = vpow2.f32 %v1300_v49  ;;  %v1159_v4 = vsub.f32 %v1147_v45, %v1157_v51  ;;  %v1165_v6 = vsub.f32 %v1155_v48, %v1157_v51 }
 0x72a   :  { %v1704_v7 = vpop.eup %1703  ;;  %1717 = vpow2.f32 %v1306_v50 }
 0x72b   :  { %v1706_v10 = vpop.eup %1705  ;;  %1719 = vrcp.f32 %v1308_v60  ;;  %v1225_v11 = vadd.f32 %v1704_v7, %v1702_v53  ;;  %v1162_v12 = vmul.f32 1.442695, %v1159_v4  ;;  %v1168_v18 = vmul.f32 1.442695, %v1165_v6 }
 0x72c   :  { %v1708_v14 = vpop.eup %1707 }
 0x72d   :  { %v1710_v16 = vpop.eup %1709  ;;  %1721 = vrcp.f32 %v1225_v11  ;;  %v1170_v17 = vadd.f32 %v1708_v14, %v1706_v10 }
 0x72e   :  { %1723 = vpow2.f32 %v1162_v12  ;;  %v1278_v19 = vmul.f32 %v1710_v16, %v1694_v29  ;;  %v1280_v20 = vmul.f32 %v1710_v16, %v1696_v37 }
 0x72f   :  { %1725 = vrcp.f32 %v1170_v17 }
 0x730   :  { %v1712_v21 = vpop.eup %1711  ;;  %1727 = vpow2.f32 %v1168_v18  ;;  %v1318_v55 = vmul.f32 %v1278_v19, %v2390_v26  ;;  %v1320_v30 = vmul.f32 %v1280_v20, %v2414_v56  ;;  %v1324_v31 = vmul.f32 %v1278_v19, %v2432_v13 }
 0x731   :  { %v1714_v62 = vpop.eup %1713  ;;  %v1326_v36 = vmul.f32 %v1280_v20, %v2416_v61 }
 0x732   :  { %v1273_v58 = vadd.f32 %v1714_v62, %v1712_v21  ;;  %v1322_v44 = vadd.f32 %v1320_v30, %v1318_v55 }
 0x733   :  { %v2461_v59 = vpop.eup %1715  ;;  %v1328_v27 = vadd.f32 %v1326_v36, %v1324_v31 }
 0x734   :  { %v2467_v39 = vpop.eup %1717  ;;  %1729 = vrcp.f32 %v1273_v58 }
 0x735   :  { %v1720_v29 = vpop.eup %1719  ;;  %v1309_v37 = vadd.f32 %v2467_v39, %v2461_v59 }
 0x736   :  { %v1314_v40 = vmul.f32 %v1720_v29, %v1698_v22  ;;  %v1316_v42 = vmul.f32 %v1720_v29, %v1700_v52 }
 0x737   :  { %v1722_v1 = vpop.eup %1721  ;;  %1731 = vrcp.f32 %v1309_v37 }
 0x738   :  { %v2471_v26 = vpop.eup %1723  ;;  %v1330_v56 = vmul.f32 %v1314_v40, %v2439_v32  ;;  %v1332_v61 = vmul.f32 %v1316_v42, %v2418_v0  ;;  %v1336_v13 = vmul.f32 %v1314_v40, %v2445_v43  ;;  %v1338_v45 = vmul.f32 %v1316_v42, %v2420_v2 }
 0x739   :  { %v1726_v46 = vpop.eup %1725  ;;  %v1231_v63 = vmul.f32 %v1722_v1, %v1702_v53  ;;  %v1233_v57 = vmul.f32 %v1722_v1, %v1704_v7  ;;  %v1343_v32 = vsel %vm1342_vm3, %v1322_v44, %v1328_v27 }
 0x73a   :  { %v1334_v47 = vadd.f32 %v1332_v61, %v1330_v56  ;;  %v1340_v15 = vadd.f32 %v1338_v45, %v1336_v13  ;;  %v1176_v48 = vmul.f32 %v1726_v46, %v1706_v10  ;;  %v1178_v22 = vmul.f32 %v1726_v46, %v1708_v14  ;;  %v1728_v49 = vpop.eup %1727 }
 0x73b   :  { %v1235_v0 = vmul.f32 %v2298_v8, %v1231_v63  ;;  %v1237_v43 = vmul.f32 %v2358_v54, %v1233_v57  ;;  %v1171_v2 = vadd.f32 %v1728_v49, %v2471_v26 }
 0x73c   :  { %v1180_v50 = vmul.f32 %v1176_v48, %v2247_v35  ;;  %v1182_v51 = vmul.f32 %v1178_v22, %v2257_v41  ;;  %v1346_v52 = vsel %vm1345_vm4, %v1343_v32, %v1334_v47 }
 0x73d   :  { %v1239_v53 = vadd.f32 %v1237_v43, %v1235_v0  ;;  %v1349_v60 = vsel %vm1348_vm5, %v1346_v52, %v1340_v15  ;;  %1733 = vrcp.f32 %v1171_v2 }
 0x73e   :  { %v1730_v4 = vpop.eup %1729  ;;  %v1184_v6 = vadd.f32 %v1182_v51, %v1180_v50  ;;  %1352 = vst.msk [vmem:[#allocation21] sm:$0xff] %vm1351_vm6, %v1349_v60 }
 0x73f   :  { %v1279_v8 = vmul.f32 %v1730_v4, %v1712_v21  ;;  %v1281_v54 = vmul.f32 %v1730_v4, %v1714_v62  ;;  %1241 = vst.msk [vmem:[#allocation19 + $0x8] sm:$0xff] %vm458_vm2, %v1239_v53 }
 0x740   :  { %1932 = shalt.err (!%p1929_p1)
}
 0x741   :  { %s1933_s25 = scalar_lea.hbm %s2561_s10, 256 }
 0x742   :  { %p1934_p2 = scmp.ne.s32.totalorder %s2561_s10, %s1933_s25  ;;  %p1937_p3 = scmp.lt.u32.totalorder %s1933_s25, %s2561_s10 }
 0x744   :  { %p1939_p4 = pnand %p1937_p3, %p1934_p2 }
 0x746   :  { %1942 = shalt.err (!%p1939_p4)
}
 0x747   :  { %1377 = dma.vmem_to_hbm [thread:$0]  %s1372_s24, 256, %s2561_s10, [#allocation20], %s2005_s29, %s2005_s29, %s2006_s30   ;;  %1186 = vst.msk [vmem:[#allocation18] sm:$0xff] %vm259_vm1, %v1184_v6  ;;  %v1732_v35 = vpop.eup %1731  ;;  %v1319_v41 = vmul.f32 %v1279_v8, %v2388_v25  ;;  %v1321_v7 = vmul.f32 %v1281_v54, %v2425_v3  ;;  %v1325_v10 = vmul.f32 %v1279_v8, %v2451_v5  ;;  %v1327_v11 = vmul.f32 %v1281_v54, %v2427_v23 }
 0x748   :  { %v1315_v12 = vmul.f32 %v1732_v35, %v2461_v59  ;;  %v1317_v14 = vmul.f32 %v1732_v35, %v2467_v39  ;;  %s2017_s10 = smov [#allocation21]   ;;  %v1734_v21 = vpop.eup %1733  ;;  %s2018_s20 = smov [#allocation18]  }
 0x749   :  { %v1323_v16 = vadd.f32 %v1321_v7, %v1319_v41  ;;  %v1329_v17 = vadd.f32 %v1327_v11, %v1325_v10  ;;  %s1383_s17 = sshll.u32 %s2017_s10, 4  ;;  %v1177_v58 = vmul.f32 %v1734_v21, %v2471_v26  ;;  %v1179_v59 = vmul.f32 %v1734_v21, %v1728_v49  ;;  %s1359_s19 = sshll.u32 %s2018_s20, 4  ;;  %s1384_s17 = int_to_ptr.vmem [resolvable:$true] %s1383_s17  ;;  %s1360_s19 = int_to_ptr.vmem [resolvable:$true] %s1359_s19 }
 0x74a   :  { %v1331_v18 = vmul.f32 %v1315_v12, %v2429_v24  ;;  %v1333_v19 = vmul.f32 %v1317_v14, %v2434_v9  ;;  %v1337_v20 = vmul.f32 %v1315_v12, %v2458_v28  ;;  %v1339_v25 = vmul.f32 %v1317_v14, %v2441_v34  ;;  %s1943_s21 = scalar_lea.vmem %s1384_s17, 256  ;;  %p1948_p6 = scmp.lt.s32.totalorder %s1384_s17, %s1384_s17 }
 0x74b   :  { %v1344_v23 = vsel %vm1342_vm3, %v1323_v16, %v1329_v17  ;;  %v1181_v9 = vmul.f32 %v2244_v33, %v1177_v58  ;;  %v1183_v34 = vmul.f32 %v2254_v38, %v1179_v59  ;;  %p1944_p5 = scmp.ne.s32.totalorder %s1384_s17, %s1943_s21  ;;  %p1949_p7 = scmp.lt.s32.totalorder %s1943_s21, %s1943_s21 }
 0x74c   :  { %v1335_v3 = vadd.f32 %v1333_v19, %v1331_v18  ;;  %v1341_v5 = vadd.f32 %v1339_v25, %v1337_v20 }
 0x74d   :  { %p1950_p8 = por %p1949_p7, %p1948_p6 }
 0x74e   :  { %v1347_v62 = vsel %vm1345_vm4, %v1344_v23, %v1335_v3 }
 0x74f   :  { %v1350_v24 = vsel %vm1348_vm5, %v1347_v62, %v1341_v5  ;;  %p1951_p9 = pnand %p1950_p8, %p1944_p5 }
 0x750   :  { %1353 = vst.msk [vmem:[#allocation21 + $0x8] sm:$0xff] %vm1351_vm6, %v1350_v24 }
 0x751   :  { %1954 = shalt.err (!%p1951_p9)
}
 0x752   :  { %s1955_s27 = scalar_lea.hbm %s2562_s11, 256 }
 0x753   :  { %p1956_p10 = scmp.ne.s32.totalorder %s2562_s11, %s1955_s27  ;;  %p1959_p11 = scmp.lt.u32.totalorder %s1955_s27, %s2562_s11 }
 0x755   :  { %p1961_p12 = pnand %p1959_p11, %p1956_p10 }
 0x757   :  { %1964 = shalt.err (!%p1961_p12)
}
 0x758   :  { %1389 = dma.vmem_to_hbm [thread:$0]  %s1384_s17, 256, %s2562_s11, [#allocation20], %s2005_s29, %s2005_s29, %s2006_s30   ;;  %v1185_v33 = vadd.f32 %v1183_v34, %v1181_v9 }
 0x759   :  { %s1965_s1 = scalar_lea.vmem %s1360_s19, 256  ;;  %p1970_p0 = scmp.lt.s32.totalorder %s1360_s19, %s1360_s19 }
 0x75a   :  { %1187 = vst.msk [vmem:[#allocation18 + $0x8] sm:$0xff] %vm259_vm1, %v1185_v33  ;;  %p1966_p13 = scmp.ne.s32.totalorder %s1360_s19, %s1965_s1  ;;  %p1971_p1 = scmp.lt.s32.totalorder %s1965_s1, %s1965_s1 }
 0x75c   :  { %p1972_p2 = por %p1971_p1, %p1970_p0 }
 0x75e   :  { %p1973_p3 = pnand %p1972_p2, %p1966_p13 }
 0x760   :  { %1976 = shalt.err (!%p1973_p3)
}
 0x761   :  { %s1977_s26 = scalar_lea.hbm %s2560_s9, 256 }
 0x762   :  { %p1978_p4 = scmp.ne.s32.totalorder %s2560_s9, %s1977_s26  ;;  %p1981_p5 = scmp.lt.u32.totalorder %s1977_s26, %s2560_s9 }
 0x764   :  { %p1983_p6 = pnand %p1981_p5, %p1978_p4 }
 0x766   :  { %1986 = shalt.err (!%p1983_p6)
}
 0x767   :  { %1365 = dma.vmem_to_hbm [thread:$0]  %s1360_s19, 256, %s2560_s9, [#allocation4], %s2005_s29, %s2005_s29, %s2006_s30  }
 0x768   :  { %1999 = dma.done.wait [#allocation4], 256  }
 0x769   :  { %2000 = vsyncadd [#allocation4], 4294967040 }
 0x76a   :  { %2001 = dma.done.wait [#allocation20], 512  }
 0x76b   :  { %2002 = vsyncadd [#allocation20], 4294966784 }
 0x76c   :  { %1399 = vsyncpa [#allocation3], 1 }
 0x76d   :  { %1400 = vsyncpa [#allocation7], 1 }
 0x76e   :  { %1401 = vsyncpa [#allocation10], 1 }
 0x76f   :  { %1402 = vsyncpa [#allocation13], 1 }
 0x770   :  { %1403 = vsyncpa [#allocation16], 1 }
 0x771   :  { %1404 = vsyncpa [#allocation4], 1 }
 0x772   :  { %1405 = vsyncpa [#allocation20], 1 }
 0x773   :  { %1406 = vsyncpa [#allocation5], 1 }

</bundles_post_ra>
